<compile_context>
chip_gen: v5e
topology: v5e:2x2
jax: 0.10.0
libtpu: 0.0.40
codegen_flags: <defaults>
</compile_context>

<pallas_src>
import functools

import jax
import jax.numpy as jnp
from jax.experimental import pallas as pl
from jax.experimental.pallas import tpu as pltpu

LANE = 128


def _round_up(n, m):
    return ((n + m - 1) // m) * m


def _pad_axis(a, axis, target):
    if a.shape[axis] == target:
        return a
    widths = [(0, 0)] * a.ndim
    widths[axis] = (0, target - a.shape[axis])
    return jnp.pad(a, widths)


def _make_kernel(L, Lp, cin_p, cout_p, inv_cnt, compute_dtype, eps_gn=1e-5):
    """Per-batch kernel; all shapes / flags static via closure."""
    needs_row_mask = (Lp != L)

    def kernel(x_ref, scale_ref, shift_ref,
               w1_ref, b1_ref, g1_ref, be1_ref,
               w2_ref, b2_ref, g2_ref, be2_ref,
               wr_ref, br_ref, gmat_ref, gmat_t_ref, o_ref):
        gm = gmat_ref[...]         # (cout_p, G) f32 one-hot group membership
        gmt = gmat_t_ref[...]      # (G, cout_p)

        if needs_row_mask:
            row = jax.lax.broadcasted_iota(jnp.int32, (Lp, 1), 0)

            def mask_rows(v):           # zero padded sequence rows
                return jnp.where(row < L, v, 0.0)
        else:
            def mask_rows(v):           # L already sublane-aligned: no-op
                return v

        def silu(v):
            return v * (1.0 / (1.0 + jnp.exp(-v)))

        def conv3(h, w_ref, b_ref, cin):
            # conv1d(k=3, pad=1) as three accumulating MXU dots against the
            # tap blocks of the (3*cin, cout) weight (no (L, 3*C) concat LHS).
            h = mask_rows(h).astype(compute_dtype)
            zrow = jnp.zeros((1, cin), compute_dtype)
            hm1 = jnp.concatenate([zrow, h[:-1, :]], axis=0)    # row l -> h[l-1]
            hp1 = jnp.concatenate([h[1:, :], zrow], axis=0)     # row l -> h[l+1]
            y = jnp.dot(hm1, w_ref[0:cin, :],
                        preferred_element_type=jnp.float32)
            y = y + jnp.dot(h, w_ref[cin:2 * cin, :],
                            preferred_element_type=jnp.float32)
            y = y + jnp.dot(hp1, w_ref[2 * cin:3 * cin, :],
                            preferred_element_type=jnp.float32)
            return mask_rows(y + b_ref[...])

        def group_norm(h, g_ref, b_ref):
            # two-pass centered stats in f32; per-group gather via one-hot
            # matmuls.  Padded channels have zero membership, padded rows are
            # masked, so neither perturbs the statistics.
            s1 = jnp.sum(h, axis=0, keepdims=True)                       # (1, C)
            mean_c = jnp.dot(
                jnp.dot(s1, gm, preferred_element_type=jnp.float32) * inv_cnt,
                gmt, preferred_element_type=jnp.float32)
            d = mask_rows(h - mean_c)
            s2 = jnp.sum(d * d, axis=0, keepdims=True)
            var_c = jnp.dot(
                jnp.dot(s2, gm, preferred_element_type=jnp.float32) * inv_cnt,
                gmt, preferred_element_type=jnp.float32)
            inv = jax.lax.rsqrt(var_c + eps_gn) * g_ref[...]    # gamma folded in
            return d * inv + b_ref[...]

        x = x_ref[0]                                            # (Lp, cin_p)

        # ---- block1: WS-conv -> GroupNorm -> (scale, shift) -> SiLU ----
        h = conv3(x, w1_ref, b1_ref, cin_p)
        h = group_norm(h, g1_ref, be1_ref)
        h = h * (scale_ref[0] + 1.0) + shift_ref[0]
        h = silu(h)

        # ---- block2: WS-conv -> GroupNorm -> SiLU ----
        h = conv3(h, w2_ref, b2_ref, cout_p)
        h = group_norm(h, g2_ref, be2_ref)
        h = silu(h)

        # ---- residual 1x1 conv + add ----
        res = jnp.dot(x.astype(compute_dtype), wr_ref[...],
                      preferred_element_type=jnp.float32) + br_ref[...]
        o_ref[0] = (h + res).astype(o_ref.dtype)

    return kernel


def _weight_standardize(w, eps=1e-5):
    # matches WeightStandardizedConv2d (f32 input branch, unbiased=False var)
    mean = jnp.mean(w, axis=(1, 2), keepdims=True)
    var = jnp.mean((w - mean) ** 2, axis=(1, 2), keepdims=True)
    return (w - mean) * jax.lax.rsqrt(var + eps)


def _conv3_weight(w, cin_pad, cout_pad, dtype):
    # (Cout, Cin, 3) -> (3*cin_pad, cout_pad), rows ordered (tap k, in-chan i)
    _, _, k = w.shape
    w = _pad_axis(_pad_axis(w, 0, cout_pad), 1, cin_pad)
    return jnp.transpose(w, (2, 1, 0)).reshape(k * cin_pad, cout_pad).astype(dtype)


@functools.partial(
    jax.jit,
    static_argnames=("groups", "compute_dtype", "out_dtype", "vmem_limit_bytes"))
def resnet_block_forward_nlc(x_nlc, time_emb, p, groups,
                             compute_dtype=jnp.bfloat16,
                             out_dtype=None,
                             vmem_limit_bytes=48 * 1024 * 1024):
    """Channels-last core: x_nlc (B, L, Cin) -> (B, L, Cout)."""
    if out_dtype is None:
        out_dtype = compute_dtype
    B, L, Cin = x_nlc.shape
    Cout = p['w1'].shape[0]
    G = groups
    assert Cout % G == 0, "dim_out must be divisible by groups"
    cpg = Cout // G
    cin_p = _round_up(Cin, LANE)
    cout_p = _round_up(Cout, LANE)
    sub = 8 * (4 // jnp.dtype(compute_dtype).itemsize)          # 8 f32 / 16 bf16
    Lp = _round_up(L, sub)

    # lane-dense, sublane-aligned activations (padded rows/channels are zero).
    x = _pad_axis(_pad_axis(x_nlc.astype(jnp.float32), 2, cin_p), 1, Lp)
    x = x.astype(compute_dtype)                                 # (B, Lp, cin_p)

    # time-embedding MLP hoisted out of the kernel: SiLU -> Linear -> split.
    if time_emb is not None and 'mlp_w' in p:
        te = jax.nn.silu(time_emb.astype(jnp.float32))
        te = te @ p['mlp_w'].astype(jnp.float32) + p['mlp_b'].astype(jnp.float32)
        scale, shift = te[:, :Cout], te[:, Cout:]
    else:
        scale = jnp.zeros((B, Cout), jnp.float32)
        shift = jnp.zeros((B, Cout), jnp.float32)
    scale = _pad_axis(scale, 1, cout_p)[:, None, :]             # (B, 1, cout_p)
    shift = _pad_axis(shift, 1, cout_p)[:, None, :]

    # weight standardization hoisted out of the kernel (runs once per call).
    w1 = _conv3_weight(_weight_standardize(p['w1']), cin_p, cout_p, compute_dtype)
    w2 = _conv3_weight(_weight_standardize(p['w2']), cout_p, cout_p, compute_dtype)

    wr_raw = p.get('wr', None)
    if wr_raw is None:                                          # nn.Identity case
        assert Cin == Cout, "res conv weight required when dim != dim_out"
        wr_raw = jnp.eye(Cout, dtype=jnp.float32)[:, :, None]
        br_raw = jnp.zeros((Cout,), jnp.float32)
    else:
        br_raw = p['br']
    wr = _pad_axis(_pad_axis(jnp.transpose(wr_raw[:, :, 0], (1, 0)), 0, cin_p),
                   1, cout_p).astype(compute_dtype)             # (cin_p, cout_p)

    def pvec(v):                                                # -> (1, cout_p) f32
        return _pad_axis(v.astype(jnp.float32), 0, cout_p)[None, :]

    ch = jnp.arange(cout_p)
    gmat = ((ch[:, None] // cpg == jnp.arange(G)[None, :]) &
            (ch[:, None] < Cout)).astype(jnp.float32)           # (cout_p, G)
    gmat_t = gmat.T                                             # (G, cout_p)

    args = (
        x, scale, shift,
        w1, pvec(p['b1']), pvec(p['g1']), pvec(p['be1']),
        w2, pvec(p['b2']), pvec(p['g2']), pvec(p['be2']),
        wr, pvec(br_raw), gmat, gmat_t,
    )

    def const_spec(a):
        # Constant parameter block: constant index map -> fetched once, stays
        # VMEM-resident.  Single-buffer it where the JAX version supports
        # pipeline_mode (saves VMEM, matters on v7x; harmless elsewhere).
        idx = lambda b, nd=a.ndim: (0,) * nd
        try:
            return pl.BlockSpec(a.shape, idx, pipeline_mode=pl.Buffered(1))
        except Exception:
            return pl.BlockSpec(a.shape, idx)

    in_specs = [
        pl.BlockSpec((1, Lp, cin_p), lambda b: (b, 0, 0)),      # per-batch x tile
        pl.BlockSpec((1, 1, cout_p), lambda b: (b, 0, 0)),      # per-batch scale
        pl.BlockSpec((1, 1, cout_p), lambda b: (b, 0, 0)),      # per-batch shift
    ] + [const_spec(a) for a in args[3:]]

    kernel = _make_kernel(L, Lp, cin_p, cout_p, 1.0 / float(L * cpg),
                          compute_dtype)

    out = pl.pallas_call(
        kernel,
        grid=(B,),
        out_shape=jax.ShapeDtypeStruct((B, Lp, cout_p), out_dtype),
        in_specs=in_specs,
        out_specs=pl.BlockSpec((1, Lp, cout_p), lambda b: (b, 0, 0)),
        compiler_params=pltpu.CompilerParams(
            dimension_semantics=("parallel",),     # megacore: batches across TCs
            vmem_limit_bytes=vmem_limit_bytes),    # raise on v5e/v6e if tiles grow
    )(*args)

    return out[:, :L, :Cout]                                    # (B, L, Cout)


def resnet_block_forward(x_ncl, time_emb, p, groups, **kw):
    """PyTorch-layout wrapper: (B, Cin, L) -> (B, Cout, L).

    Keep the surrounding model channels-last and call resnet_block_forward_nlc
    directly to avoid these boundary transposes (each is a full HBM pass)."""
    x_nlc = jnp.transpose(x_ncl, (0, 2, 1))
    out = resnet_block_forward_nlc(x_nlc, time_emb, p, groups=groups, **kw)
    return jnp.transpose(out, (0, 2, 1))


def ref_forward(x_ncl, temb, p, groups):
    """Pure-JAX reference reproducing the PyTorch module (NCL layout)."""
    Cout = p['w1'].shape[0]

    def ws(w, eps=1e-5):
        mean = jnp.mean(w, axis=(1, 2), keepdims=True)
        var = jnp.mean((w - mean) ** 2, axis=(1, 2), keepdims=True)
        return (w - mean) * jax.lax.rsqrt(var + eps)

    def conv1d(x, w, b, pad):
        y = jax.lax.conv_general_dilated(
            x, w, window_strides=(1,), padding=[(pad, pad)],
            dimension_numbers=('NCH', 'OIH', 'NCH'))
        return y + b[None, :, None]

    def gn(x, gamma, beta, eps=1e-5):
        B, C, L = x.shape
        xg = x.reshape(B, groups, C // groups, L)
        mean = jnp.mean(xg, axis=(2, 3), keepdims=True)
        var = jnp.mean((xg - mean) ** 2, axis=(2, 3), keepdims=True)
        xn = ((xg - mean) * jax.lax.rsqrt(var + eps)).reshape(B, C, L)
        return xn * gamma[None, :, None] + beta[None, :, None]

    silu = jax.nn.silu
    te = silu(temb) @ p['mlp_w'] + p['mlp_b']
    scale, shift = te[:, :Cout], te[:, Cout:]
    h = conv1d(x_ncl, ws(p['w1']), p['b1'], 1)
    h = gn(h, p['g1'], p['be1'])
    h = h * (scale[:, :, None] + 1.0) + shift[:, :, None]
    h = silu(h)
    h = conv1d(h, ws(p['w2']), p['b2'], 1)
    h = gn(h, p['g2'], p['be2'])
    h = silu(h)
    res = conv1d(x_ncl, p['wr'], p['br'], 0)
    return h + res


if __name__ == "__main__":
    B, Cin, Cout, T, G = 2, 4, 16, 32, 8

    key = jax.random.PRNGKey(0)
    ks = jax.random.split(key, 16)

    def nrm(k, shape, scale=0.1):
        return scale * jax.random.normal(k, shape, jnp.float32)

    params = dict(
        mlp_w=nrm(ks[0], (T, 2 * Cout)),
        mlp_b=nrm(ks[1], (2 * Cout,)),
        w1=nrm(ks[2], (Cout, Cin, 3), 0.5),
        b1=nrm(ks[3], (Cout,)),
        g1=1.0 + nrm(ks[4], (Cout,)),
        be1=nrm(ks[5], (Cout,)),
        w2=nrm(ks[6], (Cout, Cout, 3), 0.5),
        b2=nrm(ks[7], (Cout,)),
        g2=1.0 + nrm(ks[8], (Cout,)),
        be2=nrm(ks[9], (Cout,)),
        wr=nrm(ks[10], (Cout, Cin, 1), 0.5),
        br=nrm(ks[11], (Cout,)),
    )
    time_emb = jax.random.normal(ks[13], (B, T), jnp.float32)

    # f32 path, L sublane-aligned (fast path, no row masks) -- strict check.
    L = 16
    x = jax.random.normal(ks[12], (B, Cin, L), jnp.float32)
    out = jax.block_until_ready(
        resnet_block_forward(x, time_emb, params, groups=G,
                             compute_dtype=jnp.float32))
    ref = jax.block_until_ready(ref_forward(x, time_emb, params, groups=G))
    assert out.shape == (B, Cout, L)
    assert jnp.allclose(out, ref, atol=1e-4, rtol=1e-4), (
        float(jnp.max(jnp.abs(out - ref))))

    # f32 path, L not sublane-aligned (exercises padded-row masking).
    L2 = 11
    x2 = jax.random.normal(ks[14], (B, Cin, L2), jnp.float32)
    out2 = jax.block_until_ready(
        resnet_block_forward(x2, time_emb, params, groups=G,
                             compute_dtype=jnp.float32))
    ref2 = jax.block_until_ready(ref_forward(x2, time_emb, params, groups=G))
    assert out2.shape == (B, Cout, L2)
    assert jnp.allclose(out2, ref2, atol=1e-4, rtol=1e-4), (
        float(jnp.max(jnp.abs(out2 - ref2))))

    # default bf16 MXU-operand path (f32 accumulation) -- loose tolerance.
    out_bf = jax.block_until_ready(
        resnet_block_forward(x, time_emb, params, groups=G))
    assert out_bf.shape == (B, Cout, L)
    assert jnp.allclose(out_bf.astype(jnp.float32), ref, atol=0.15, rtol=0.05), (
        float(jnp.max(jnp.abs(out_bf.astype(jnp.float32) - ref))))

    print("KERNEL_OK")
</pallas_src>

<mosaic_0001>
module attributes {stable_mosaic.version = 11 : i64} {
  func.func @kernel(%arg0: i32, %arg1: memref<1x16x128xf32, #tpu.memory_space<vmem>>, %arg2: memref<1x1x128xf32, #tpu.memory_space<vmem>>, %arg3: memref<1x1x128xf32, #tpu.memory_space<vmem>>, %arg4: memref<384x128xf32, #tpu.memory_space<vmem>>, %arg5: memref<1x128xf32, #tpu.memory_space<vmem>>, %arg6: memref<1x128xf32, #tpu.memory_space<vmem>>, %arg7: memref<1x128xf32, #tpu.memory_space<vmem>>, %arg8: memref<384x128xf32, #tpu.memory_space<vmem>>, %arg9: memref<1x128xf32, #tpu.memory_space<vmem>>, %arg10: memref<1x128xf32, #tpu.memory_space<vmem>>, %arg11: memref<1x128xf32, #tpu.memory_space<vmem>>, %arg12: memref<128x128xf32, #tpu.memory_space<vmem>>, %arg13: memref<1x128xf32, #tpu.memory_space<vmem>>, %arg14: memref<128x8xf32, #tpu.memory_space<vmem>>, %arg15: memref<8x128xf32, #tpu.memory_space<vmem>>, %arg16: memref<1x16x128xf32, #tpu.memory_space<vmem>>) attributes {dimension_semantics = [#tpu.dimension_semantics<parallel>], iteration_bounds = array<i64: 2>, scalar_prefetch = 0 : i64, scratch_operands = 0 : i64, tpu.core_type = #tpu.core_type<tc>, window_params = [{transform_indices = @transform_0, window_bounds = array<i64: 1, 16, 128>}, {transform_indices = @transform_1, window_bounds = array<i64: 1, 1, 128>}, {transform_indices = @transform_2, window_bounds = array<i64: 1, 1, 128>}, {pipeline_mode = #tpu.pipeline_mode<synchronous>, transform_indices = @transform_3, window_bounds = array<i64: 384, 128>}, {pipeline_mode = #tpu.pipeline_mode<synchronous>, transform_indices = @transform_4, window_bounds = array<i64: 1, 128>}, {pipeline_mode = #tpu.pipeline_mode<synchronous>, transform_indices = @transform_5, window_bounds = array<i64: 1, 128>}, {pipeline_mode = #tpu.pipeline_mode<synchronous>, transform_indices = @transform_6, window_bounds = array<i64: 1, 128>}, {pipeline_mode = #tpu.pipeline_mode<synchronous>, transform_indices = @transform_7, window_bounds = array<i64: 384, 128>}, {pipeline_mode = #tpu.pipeline_mode<synchronous>, transform_indices = @transform_8, window_bounds = array<i64: 1, 128>}, {pipeline_mode = #tpu.pipeline_mode<synchronous>, transform_indices = @transform_9, window_bounds = array<i64: 1, 128>}, {pipeline_mode = #tpu.pipeline_mode<synchronous>, transform_indices = @transform_10, window_bounds = array<i64: 1, 128>}, {pipeline_mode = #tpu.pipeline_mode<synchronous>, transform_indices = @transform_11, window_bounds = array<i64: 128, 128>}, {pipeline_mode = #tpu.pipeline_mode<synchronous>, transform_indices = @transform_12, window_bounds = array<i64: 1, 128>}, {pipeline_mode = #tpu.pipeline_mode<synchronous>, transform_indices = @transform_13, window_bounds = array<i64: 128, 8>}, {pipeline_mode = #tpu.pipeline_mode<synchronous>, transform_indices = @transform_14, window_bounds = array<i64: 8, 128>}, {transform_indices = @transform_15, window_bounds = array<i64: 1, 16, 128>}]} {
    %c0 = arith.constant 0 : index
    %c0_0 = arith.constant 0 : index
    %0 = vector.load %arg14[%c0, %c0_0] : memref<128x8xf32, #tpu.memory_space<vmem>>, vector<128x8xf32>
    %c0_1 = arith.constant 0 : index
    %c0_2 = arith.constant 0 : index
    %1 = vector.load %arg15[%c0_1, %c0_2] : memref<8x128xf32, #tpu.memory_space<vmem>>, vector<8x128xf32>
    %c0_3 = arith.constant 0 : index
    %c0_4 = arith.constant 0 : index
    %c0_5 = arith.constant 0 : index
    %2 = vector.load %arg1[%c0_3, %c0_4, %c0_5] : memref<1x16x128xf32, #tpu.memory_space<vmem>>, vector<1x16x128xf32>
    %3 = vector.shape_cast %2 : vector<1x16x128xf32> to vector<16x128xf32>
    %cst = arith.constant 0.000000e+00 : f32
    %4 = vector.broadcast %cst : f32 to vector<1x128xf32>
    %5 = vector.extract_strided_slice %3 {offsets = [0, 0], sizes = [15, 128], strides = [1, 1]} : vector<16x128xf32> to vector<15x128xf32>
    %6 = tpu.concatenate %4, %5 in 0 : vector<1x128xf32>, vector<15x128xf32> -> vector<16x128xf32>
    %7 = vector.extract_strided_slice %3 {offsets = [1, 0], sizes = [15, 128], strides = [1, 1]} : vector<16x128xf32> to vector<15x128xf32>
    %8 = tpu.concatenate %7, %4 in 0 : vector<15x128xf32>, vector<1x128xf32> -> vector<16x128xf32>
    %c0_6 = arith.constant 0 : index
    %c0_7 = arith.constant 0 : index
    %9 = vector.load %arg4[%c0_6, %c0_7] : memref<384x128xf32, #tpu.memory_space<vmem>>, vector<128x128xf32>
    %cst_8 = arith.constant dense<0.000000e+00> : vector<16x128xf32>
    %10 = tpu.matmul %6, %9, %cst_8 {dimension_numbers = #tpu.dot_dimension_numbers<[1], [0], [0], [1], [0, 0, 1, 1], [], []>} : vector<16x128xf32>, vector<128x128xf32>, vector<16x128xf32> -> vector<16x128xf32>
    %c128 = arith.constant 128 : index
    %c0_9 = arith.constant 0 : index
    %11 = vector.load %arg4[%c128, %c0_9] : memref<384x128xf32, #tpu.memory_space<vmem>>, vector<128x128xf32>
    %cst_10 = arith.constant dense<0.000000e+00> : vector<16x128xf32>
    %12 = tpu.matmul %3, %11, %cst_10 {dimension_numbers = #tpu.dot_dimension_numbers<[1], [0], [0], [1], [0, 0, 1, 1], [], []>} : vector<16x128xf32>, vector<128x128xf32>, vector<16x128xf32> -> vector<16x128xf32>
    %13 = arith.addf %10, %12 : vector<16x128xf32>
    %c256 = arith.constant 256 : index
    %c0_11 = arith.constant 0 : index
    %14 = vector.load %arg4[%c256, %c0_11] : memref<384x128xf32, #tpu.memory_space<vmem>>, vector<128x128xf32>
    %cst_12 = arith.constant dense<0.000000e+00> : vector<16x128xf32>
    %15 = tpu.matmul %8, %14, %cst_12 {dimension_numbers = #tpu.dot_dimension_numbers<[1], [0], [0], [1], [0, 0, 1, 1], [], []>} : vector<16x128xf32>, vector<128x128xf32>, vector<16x128xf32> -> vector<16x128xf32>
    %16 = arith.addf %13, %15 : vector<16x128xf32>
    %c0_13 = arith.constant 0 : index
    %c0_14 = arith.constant 0 : index
    %17 = vector.load %arg5[%c0_13, %c0_14] : memref<1x128xf32, #tpu.memory_space<vmem>>, vector<1x128xf32>
    %18 = vector.broadcast %17 : vector<1x128xf32> to vector<16x128xf32>
    %19 = arith.addf %16, %18 : vector<16x128xf32>
    %cst_15 = arith.constant dense<0.000000e+00> : vector<128xf32>
    %20 = vector.multi_reduction <add>, %19, %cst_15 [0] : vector<16x128xf32> to vector<128xf32>
    %21 = vector.shape_cast %20 : vector<128xf32> to vector<1x128xf32>
    %cst_16 = arith.constant dense<0.000000e+00> : vector<1x8xf32>
    %22 = tpu.matmul %21, %0, %cst_16 {dimension_numbers = #tpu.dot_dimension_numbers<[1], [0], [0], [1], [0, 0, 1, 1], [], []>} : vector<1x128xf32>, vector<128x8xf32>, vector<1x8xf32> -> vector<1x8xf32>
    %cst_17 = arith.constant 3.125000e-02 : f32
    %23 = vector.broadcast %cst_17 : f32 to vector<1x8xf32>
    %24 = arith.mulf %22, %23 : vector<1x8xf32>
    %cst_18 = arith.constant dense<0.000000e+00> : vector<1x128xf32>
    %25 = tpu.matmul %24, %1, %cst_18 {dimension_numbers = #tpu.dot_dimension_numbers<[1], [0], [0], [1], [0, 0, 1, 1], [], []>} : vector<1x8xf32>, vector<8x128xf32>, vector<1x128xf32> -> vector<1x128xf32>
    %26 = vector.broadcast %25 : vector<1x128xf32> to vector<16x128xf32>
    %27 = arith.subf %19, %26 : vector<16x128xf32>
    %28 = arith.mulf %27, %27 : vector<16x128xf32>
    %cst_19 = arith.constant dense<0.000000e+00> : vector<128xf32>
    %29 = vector.multi_reduction <add>, %28, %cst_19 [0] : vector<16x128xf32> to vector<128xf32>
    %30 = vector.shape_cast %29 : vector<128xf32> to vector<1x128xf32>
    %cst_20 = arith.constant dense<0.000000e+00> : vector<1x8xf32>
    %31 = tpu.matmul %30, %0, %cst_20 {dimension_numbers = #tpu.dot_dimension_numbers<[1], [0], [0], [1], [0, 0, 1, 1], [], []>} : vector<1x128xf32>, vector<128x8xf32>, vector<1x8xf32> -> vector<1x8xf32>
    %cst_21 = arith.constant 3.125000e-02 : f32
    %32 = vector.broadcast %cst_21 : f32 to vector<1x8xf32>
    %33 = arith.mulf %31, %32 : vector<1x8xf32>
    %cst_22 = arith.constant dense<0.000000e+00> : vector<1x128xf32>
    %34 = tpu.matmul %33, %1, %cst_22 {dimension_numbers = #tpu.dot_dimension_numbers<[1], [0], [0], [1], [0, 0, 1, 1], [], []>} : vector<1x8xf32>, vector<8x128xf32>, vector<1x128xf32> -> vector<1x128xf32>
    %cst_23 = arith.constant 9.99999974E-6 : f32
    %35 = vector.broadcast %cst_23 : f32 to vector<1x128xf32>
    %36 = arith.addf %34, %35 : vector<1x128xf32>
    %37 = math.rsqrt %36 : vector<1x128xf32>
    %c0_24 = arith.constant 0 : index
    %c0_25 = arith.constant 0 : index
    %38 = vector.load %arg6[%c0_24, %c0_25] : memref<1x128xf32, #tpu.memory_space<vmem>>, vector<1x128xf32>
    %39 = arith.mulf %37, %38 : vector<1x128xf32>
    %40 = vector.broadcast %39 : vector<1x128xf32> to vector<16x128xf32>
    %41 = arith.mulf %27, %40 : vector<16x128xf32>
    %c0_26 = arith.constant 0 : index
    %c0_27 = arith.constant 0 : index
    %42 = vector.load %arg7[%c0_26, %c0_27] : memref<1x128xf32, #tpu.memory_space<vmem>>, vector<1x128xf32>
    %43 = vector.broadcast %42 : vector<1x128xf32> to vector<16x128xf32>
    %44 = arith.addf %41, %43 : vector<16x128xf32>
    %c0_28 = arith.constant 0 : index
    %c0_29 = arith.constant 0 : index
    %c0_30 = arith.constant 0 : index
    %45 = vector.load %arg2[%c0_28, %c0_29, %c0_30] : memref<1x1x128xf32, #tpu.memory_space<vmem>>, vector<1x1x128xf32>
    %46 = vector.shape_cast %45 : vector<1x1x128xf32> to vector<1x128xf32>
    %cst_31 = arith.constant 1.000000e+00 : f32
    %47 = vector.broadcast %cst_31 : f32 to vector<1x128xf32>
    %48 = arith.addf %46, %47 : vector<1x128xf32>
    %49 = vector.broadcast %48 : vector<1x128xf32> to vector<16x128xf32>
    %50 = arith.mulf %44, %49 : vector<16x128xf32>
    %c0_32 = arith.constant 0 : index
    %c0_33 = arith.constant 0 : index
    %c0_34 = arith.constant 0 : index
    %51 = vector.load %arg3[%c0_32, %c0_33, %c0_34] : memref<1x1x128xf32, #tpu.memory_space<vmem>>, vector<1x1x128xf32>
    %52 = vector.shape_cast %51 : vector<1x1x128xf32> to vector<1x128xf32>
    %53 = vector.broadcast %52 : vector<1x128xf32> to vector<16x128xf32>
    %54 = arith.addf %50, %53 : vector<16x128xf32>
    %cst_35 = arith.constant 0.000000e+00 : f32
    %55 = vector.broadcast %cst_35 : f32 to vector<16x128xf32>
    %56 = arith.subf %55, %54 : vector<16x128xf32>
    %57 = math.exp %56 : vector<16x128xf32>
    %cst_36 = arith.constant 1.000000e+00 : f32
    %58 = vector.broadcast %cst_36 : f32 to vector<16x128xf32>
    %59 = arith.addf %58, %57 : vector<16x128xf32>
    %cst_37 = arith.constant 1.000000e+00 : f32
    %60 = vector.broadcast %cst_37 : f32 to vector<16x128xf32>
    %61 = arith.divf %60, %59 : vector<16x128xf32>
    %62 = arith.mulf %54, %61 : vector<16x128xf32>
    %cst_38 = arith.constant 0.000000e+00 : f32
    %63 = vector.broadcast %cst_38 : f32 to vector<1x128xf32>
    %64 = vector.extract_strided_slice %62 {offsets = [0, 0], sizes = [15, 128], strides = [1, 1]} : vector<16x128xf32> to vector<15x128xf32>
    %65 = tpu.concatenate %63, %64 in 0 : vector<1x128xf32>, vector<15x128xf32> -> vector<16x128xf32>
    %66 = vector.extract_strided_slice %62 {offsets = [1, 0], sizes = [15, 128], strides = [1, 1]} : vector<16x128xf32> to vector<15x128xf32>
    %67 = tpu.concatenate %66, %63 in 0 : vector<15x128xf32>, vector<1x128xf32> -> vector<16x128xf32>
    %c0_39 = arith.constant 0 : index
    %c0_40 = arith.constant 0 : index
    %68 = vector.load %arg8[%c0_39, %c0_40] : memref<384x128xf32, #tpu.memory_space<vmem>>, vector<128x128xf32>
    %cst_41 = arith.constant dense<0.000000e+00> : vector<16x128xf32>
    %69 = tpu.matmul %65, %68, %cst_41 {dimension_numbers = #tpu.dot_dimension_numbers<[1], [0], [0], [1], [0, 0, 1, 1], [], []>} : vector<16x128xf32>, vector<128x128xf32>, vector<16x128xf32> -> vector<16x128xf32>
    %c128_42 = arith.constant 128 : index
    %c0_43 = arith.constant 0 : index
    %70 = vector.load %arg8[%c128_42, %c0_43] : memref<384x128xf32, #tpu.memory_space<vmem>>, vector<128x128xf32>
    %cst_44 = arith.constant dense<0.000000e+00> : vector<16x128xf32>
    %71 = tpu.matmul %62, %70, %cst_44 {dimension_numbers = #tpu.dot_dimension_numbers<[1], [0], [0], [1], [0, 0, 1, 1], [], []>} : vector<16x128xf32>, vector<128x128xf32>, vector<16x128xf32> -> vector<16x128xf32>
    %72 = arith.addf %69, %71 : vector<16x128xf32>
    %c256_45 = arith.constant 256 : index
    %c0_46 = arith.constant 0 : index
    %73 = vector.load %arg8[%c256_45, %c0_46] : memref<384x128xf32, #tpu.memory_space<vmem>>, vector<128x128xf32>
    %cst_47 = arith.constant dense<0.000000e+00> : vector<16x128xf32>
    %74 = tpu.matmul %67, %73, %cst_47 {dimension_numbers = #tpu.dot_dimension_numbers<[1], [0], [0], [1], [0, 0, 1, 1], [], []>} : vector<16x128xf32>, vector<128x128xf32>, vector<16x128xf32> -> vector<16x128xf32>
    %75 = arith.addf %72, %74 : vector<16x128xf32>
    %c0_48 = arith.constant 0 : index
    %c0_49 = arith.constant 0 : index
    %76 = vector.load %arg9[%c0_48, %c0_49] : memref<1x128xf32, #tpu.memory_space<vmem>>, vector<1x128xf32>
    %77 = vector.broadcast %76 : vector<1x128xf32> to vector<16x128xf32>
    %78 = arith.addf %75, %77 : vector<16x128xf32>
    %cst_50 = arith.constant dense<0.000000e+00> : vector<128xf32>
    %79 = vector.multi_reduction <add>, %78, %cst_50 [0] : vector<16x128xf32> to vector<128xf32>
    %80 = vector.shape_cast %79 : vector<128xf32> to vector<1x128xf32>
    %cst_51 = arith.constant dense<0.000000e+00> : vector<1x8xf32>
    %81 = tpu.matmul %80, %0, %cst_51 {dimension_numbers = #tpu.dot_dimension_numbers<[1], [0], [0], [1], [0, 0, 1, 1], [], []>} : vector<1x128xf32>, vector<128x8xf32>, vector<1x8xf32> -> vector<1x8xf32>
    %cst_52 = arith.constant 3.125000e-02 : f32
    %82 = vector.broadcast %cst_52 : f32 to vector<1x8xf32>
    %83 = arith.mulf %81, %82 : vector<1x8xf32>
    %cst_53 = arith.constant dense<0.000000e+00> : vector<1x128xf32>
    %84 = tpu.matmul %83, %1, %cst_53 {dimension_numbers = #tpu.dot_dimension_numbers<[1], [0], [0], [1], [0, 0, 1, 1], [], []>} : vector<1x8xf32>, vector<8x128xf32>, vector<1x128xf32> -> vector<1x128xf32>
    %85 = vector.broadcast %84 : vector<1x128xf32> to vector<16x128xf32>
    %86 = arith.subf %78, %85 : vector<16x128xf32>
    %87 = arith.mulf %86, %86 : vector<16x128xf32>
    %cst_54 = arith.constant dense<0.000000e+00> : vector<128xf32>
    %88 = vector.multi_reduction <add>, %87, %cst_54 [0] : vector<16x128xf32> to vector<128xf32>
    %89 = vector.shape_cast %88 : vector<128xf32> to vector<1x128xf32>
    %cst_55 = arith.constant dense<0.000000e+00> : vector<1x8xf32>
    %90 = tpu.matmul %89, %0, %cst_55 {dimension_numbers = #tpu.dot_dimension_numbers<[1], [0], [0], [1], [0, 0, 1, 1], [], []>} : vector<1x128xf32>, vector<128x8xf32>, vector<1x8xf32> -> vector<1x8xf32>
    %cst_56 = arith.constant 3.125000e-02 : f32
    %91 = vector.broadcast %cst_56 : f32 to vector<1x8xf32>
    %92 = arith.mulf %90, %91 : vector<1x8xf32>
    %cst_57 = arith.constant dense<0.000000e+00> : vector<1x128xf32>
    %93 = tpu.matmul %92, %1, %cst_57 {dimension_numbers = #tpu.dot_dimension_numbers<[1], [0], [0], [1], [0, 0, 1, 1], [], []>} : vector<1x8xf32>, vector<8x128xf32>, vector<1x128xf32> -> vector<1x128xf32>
    %cst_58 = arith.constant 9.99999974E-6 : f32
    %94 = vector.broadcast %cst_58 : f32 to vector<1x128xf32>
    %95 = arith.addf %93, %94 : vector<1x128xf32>
    %96 = math.rsqrt %95 : vector<1x128xf32>
    %c0_59 = arith.constant 0 : index
    %c0_60 = arith.constant 0 : index
    %97 = vector.load %arg10[%c0_59, %c0_60] : memref<1x128xf32, #tpu.memory_space<vmem>>, vector<1x128xf32>
    %98 = arith.mulf %96, %97 : vector<1x128xf32>
    %99 = vector.broadcast %98 : vector<1x128xf32> to vector<16x128xf32>
    %100 = arith.mulf %86, %99 : vector<16x128xf32>
    %c0_61 = arith.constant 0 : index
    %c0_62 = arith.constant 0 : index
    %101 = vector.load %arg11[%c0_61, %c0_62] : memref<1x128xf32, #tpu.memory_space<vmem>>, vector<1x128xf32>
    %102 = vector.broadcast %101 : vector<1x128xf32> to vector<16x128xf32>
    %103 = arith.addf %100, %102 : vector<16x128xf32>
    %cst_63 = arith.constant 0.000000e+00 : f32
    %104 = vector.broadcast %cst_63 : f32 to vector<16x128xf32>
    %105 = arith.subf %104, %103 : vector<16x128xf32>
    %106 = math.exp %105 : vector<16x128xf32>
    %cst_64 = arith.constant 1.000000e+00 : f32
    %107 = vector.broadcast %cst_64 : f32 to vector<16x128xf32>
    %108 = arith.addf %107, %106 : vector<16x128xf32>
    %cst_65 = arith.constant 1.000000e+00 : f32
    %109 = vector.broadcast %cst_65 : f32 to vector<16x128xf32>
    %110 = arith.divf %109, %108 : vector<16x128xf32>
    %111 = arith.mulf %103, %110 : vector<16x128xf32>
    %c0_66 = arith.constant 0 : index
    %c0_67 = arith.constant 0 : index
    %112 = vector.load %arg12[%c0_66, %c0_67] : memref<128x128xf32, #tpu.memory_space<vmem>>, vector<128x128xf32>
    %cst_68 = arith.constant dense<0.000000e+00> : vector<16x128xf32>
    %113 = tpu.matmul %3, %112, %cst_68 {dimension_numbers = #tpu.dot_dimension_numbers<[1], [0], [0], [1], [0, 0, 1, 1], [], []>} : vector<16x128xf32>, vector<128x128xf32>, vector<16x128xf32> -> vector<16x128xf32>
    %c0_69 = arith.constant 0 : index
    %c0_70 = arith.constant 0 : index
    %114 = vector.load %arg13[%c0_69, %c0_70] : memref<1x128xf32, #tpu.memory_space<vmem>>, vector<1x128xf32>
    %115 = vector.broadcast %114 : vector<1x128xf32> to vector<16x128xf32>
    %116 = arith.addf %113, %115 : vector<16x128xf32>
    %117 = arith.addf %111, %116 : vector<16x128xf32>
    %c0_71 = arith.constant 0 : index
    %c0_72 = arith.constant 0 : index
    %c0_73 = arith.constant 0 : index
    %118 = vector.load %arg16[%c0_71, %c0_72, %c0_73] : memref<1x16x128xf32, #tpu.memory_space<vmem>>, vector<1x16x128xf32>
    %119 = vector.shape_cast %118 : vector<1x16x128xf32> to vector<16x128xf32>
    %120 = vector.shape_cast %117 : vector<16x128xf32> to vector<1x16x128xf32>
    tpu.vector_store %arg16[%c0_71, %c0_72, %c0_73], %120 {strides = array<i32>} : memref<1x16x128xf32, #tpu.memory_space<vmem>>, vector<1x16x128xf32>,
    return
  }
  func.func @transform_0(%arg0: i32) -> (i32, i32, i32) {
    %c0_i32 = arith.constant 0 : i32
    %c0_i32_0 = arith.constant 0 : i32
    %c0_i32_1 = arith.constant 0 : i32
    return %arg0, %c0_i32, %c0_i32_0 : i32, i32, i32
  }
  func.func @transform_1(%arg0: i32) -> (i32, i32, i32) {
    %c0_i32 = arith.constant 0 : i32
    %c0_i32_0 = arith.constant 0 : i32
    %c0_i32_1 = arith.constant 0 : i32
    return %arg0, %c0_i32, %c0_i32_0 : i32, i32, i32
  }
  func.func @transform_2(%arg0: i32) -> (i32, i32, i32) {
    %c0_i32 = arith.constant 0 : i32
    %c0_i32_0 = arith.constant 0 : i32
    %c0_i32_1 = arith.constant 0 : i32
    return %arg0, %c0_i32, %c0_i32_0 : i32, i32, i32
  }
  func.func @transform_3(%arg0: i32) -> (i32, i32) {
    %c0_i32 = arith.constant 0 : i32
    %c0_i32_0 = arith.constant 0 : i32
    %c0_i32_1 = arith.constant 0 : i32
    return %c0_i32, %c0_i32_0 : i32, i32
  }
  func.func @transform_4(%arg0: i32) -> (i32, i32) {
    %c0_i32 = arith.constant 0 : i32
    %c0_i32_0 = arith.constant 0 : i32
    %c0_i32_1 = arith.constant 0 : i32
    return %c0_i32, %c0_i32_0 : i32, i32
  }
  func.func @transform_5(%arg0: i32) -> (i32, i32) {
    %c0_i32 = arith.constant 0 : i32
    %c0_i32_0 = arith.constant 0 : i32
    %c0_i32_1 = arith.constant 0 : i32
    return %c0_i32, %c0_i32_0 : i32, i32
  }
  func.func @transform_6(%arg0: i32) -> (i32, i32) {
    %c0_i32 = arith.constant 0 : i32
    %c0_i32_0 = arith.constant 0 : i32
    %c0_i32_1 = arith.constant 0 : i32
    return %c0_i32, %c0_i32_0 : i32, i32
  }
  func.func @transform_7(%arg0: i32) -> (i32, i32) {
    %c0_i32 = arith.constant 0 : i32
    %c0_i32_0 = arith.constant 0 : i32
    %c0_i32_1 = arith.constant 0 : i32
    return %c0_i32, %c0_i32_0 : i32, i32
  }
  func.func @transform_8(%arg0: i32) -> (i32, i32) {
    %c0_i32 = arith.constant 0 : i32
    %c0_i32_0 = arith.constant 0 : i32
    %c0_i32_1 = arith.constant 0 : i32
    return %c0_i32, %c0_i32_0 : i32, i32
  }
  func.func @transform_9(%arg0: i32) -> (i32, i32) {
    %c0_i32 = arith.constant 0 : i32
    %c0_i32_0 = arith.constant 0 : i32
    %c0_i32_1 = arith.constant 0 : i32
    return %c0_i32, %c0_i32_0 : i32, i32
  }
  func.func @transform_10(%arg0: i32) -> (i32, i32) {
    %c0_i32 = arith.constant 0 : i32
    %c0_i32_0 = arith.constant 0 : i32
    %c0_i32_1 = arith.constant 0 : i32
    return %c0_i32, %c0_i32_0 : i32, i32
  }
  func.func @transform_11(%arg0: i32) -> (i32, i32) {
    %c0_i32 = arith.constant 0 : i32
    %c0_i32_0 = arith.constant 0 : i32
    %c0_i32_1 = arith.constant 0 : i32
    return %c0_i32, %c0_i32_0 : i32, i32
  }
  func.func @transform_12(%arg0: i32) -> (i32, i32) {
    %c0_i32 = arith.constant 0 : i32
    %c0_i32_0 = arith.constant 0 : i32
    %c0_i32_1 = arith.constant 0 : i32
    return %c0_i32, %c0_i32_0 : i32, i32
  }
  func.func @transform_13(%arg0: i32) -> (i32, i32) {
    %c0_i32 = arith.constant 0 : i32
    %c0_i32_0 = arith.constant 0 : i32
    %c0_i32_1 = arith.constant 0 : i32
    return %c0_i32, %c0_i32_0 : i32, i32
  }
  func.func @transform_14(%arg0: i32) -> (i32, i32) {
    %c0_i32 = arith.constant 0 : i32
    %c0_i32_0 = arith.constant 0 : i32
    %c0_i32_1 = arith.constant 0 : i32
    return %c0_i32, %c0_i32_0 : i32, i32
  }
  func.func @transform_15(%arg0: i32) -> (i32, i32, i32) {
    %c0_i32 = arith.constant 0 : i32
    %c0_i32_0 = arith.constant 0 : i32
    %c0_i32_1 = arith.constant 0 : i32
    return %arg0, %c0_i32, %c0_i32_0 : i32, i32, i32
  }
}

</mosaic_0001>

<bundles_post_ra>
// kernel: resnet_block_forward_nlc.1
= control target key start
LH: loop header
LB: loop body
LE: loop exit
PB: predicated region body
PF: predicated region fallthrough
CT: control target
= control target key end

     0   :  { %s2225_s0 = inlined_call_operand.vmem [shape: f32[2,16,128], index: 0, kind: input, shape index: {}]   ;;  %s2226_s1 = inlined_call_operand.vmem [shape: f32[2,1,128], index: 1, kind: input, shape index: {}]   ;;  %s2227_s2 = inlined_call_operand.vmem [shape: f32[2,1,128], index: 2, kind: input, shape index: {}]   ;;  %s2228_s3 = inlined_call_operand.vmem [shape: f32[384,128], index: 3, kind: input, shape index: {}]   ;;  %s2229_s4 = inlined_call_operand.vmem [shape: f32[1,128], index: 4, kind: input, shape index: {}]   ;;  %s2230_s5 = inlined_call_operand.vmem [shape: f32[1,128], index: 5, kind: input, shape index: {}]   ;;  %s2231_s6 = inlined_call_operand.vmem [shape: f32[1,128], index: 6, kind: input, shape index: {}]   ;;  %s2232_s7 = inlined_call_operand.vmem [shape: f32[384,128], index: 7, kind: input, shape index: {}]   ;;  %s2233_s8 = inlined_call_operand.vmem [shape: f32[1,128], index: 8, kind: input, shape index: {}]   ;;  %s2234_s9 = inlined_call_operand.vmem [shape: f32[1,128], index: 9, kind: input, shape index: {}]   ;;  %s2235_s10 = inlined_call_operand.vmem [shape: f32[1,128], index: 10, kind: input, shape index: {}]   ;;  %s2236_s11 = inlined_call_operand.vmem [shape: f32[128,128], index: 11, kind: input, shape index: {}]   ;;  %s2237_s12 = inlined_call_operand.vmem [shape: f32[1,128], index: 12, kind: input, shape index: {}]   ;;  %s2238_s13 = inlined_call_operand.vmem [shape: f32[128,8], index: 13, kind: input, shape index: {}]   ;;  %s2239_s14 = inlined_call_operand.vmem [shape: f32[8,128], index: 14, kind: input, shape index: {}]   ;;  %s2240_s15 = inlined_call_operand.hbm [shape: f32[2,16,128], index: 15, kind: output, shape index: {}]  }
   0x1   :  { %2249 = sst [smem:[#allocation12_spill]] %s2225_s0 }
   0x2   :  { %2250 = sst [smem:[#allocation13_spill]] %s2226_s1 }
   0x3   :  { %20 = vsyncpa [#allocation3], 0 }
   0x4   :  { %22 = vsyncpa [#allocation3 + $0x1], 0  ;;  %s1550_s18 = smov 0   ;;  %s1552_s19 = smov 0  }
   0x5   :  { %s1554_s20 = smov 0   ;;  %s1556_s21 = smov 0  }
   0x6 LB: > { %2251 = sst [smem:[#allocation5_spill]] %s1454_s18  ;;  %s1571_s22 = sadd.s32 4294967295, %s1466_s21   ;;  %s1466_s21 = sphi %s1556_s21, %s2268_s21   ;;  %s1462_s20 = sphi %s1554_s20, %s2273_s20   ;;  %s1458_s19 = sphi %s1552_s19, %s2272_s19   ;;  %s1454_s18 = sphi %s1550_s18, %s2271_s18  }
   0x7   : > { %2252 = sst [smem:[#allocation6_spill]] %s1462_s20  ;;  %s1313_s23 = sadd.s32 4294967294, %s1466_s21  }
   0x8   : > { %2253 = sst [smem:[#allocation7_spill]] %s1466_s21  ;;  %s1575_s24 = sadd.s32 1, %s1466_s21  }
   0x9   : > { %2254 = sst [smem:[#allocation8_spill]] %s1575_s24  ;;  %s365_s25 = sadd.s32 1, %s1462_s20 }
   0xa   : > { %s362_s26 = ssub.s32 %s1466_s21, %s1575_s24  ;;  %p375_p0 = scmp.ne.s32.totalorder %s1462_s20, %s1458_s19 }
   0xb   : > { %p363_p1 = scmp.eq.s32.totalorder %s362_s26, 0  ;;  %p376_p2 = scmp.eq.s32.totalorder %s1571_s22, 1 }
   0xc   : > { %p381_p3 = scmp.ne.s32.totalorder %s1458_s19, %s1454_s18  ;;  %p382_p4 = scmp.eq.s32.totalorder %s1313_s23, 1 }
   0xd   : > { %s1586_s27 = scalar_select %p363_p1, %s1462_s20, %s365_s25  }
   0xe   : > { %p1588_p5 = por %p376_p2, %p375_p0  ;;  %p1592_p6 = por %p382_p4, %p381_p3 }
   0xf   : > { %2255 = sst [smem:[#allocation9_spill]] %s1586_s27  ;;  %p1316_p7 = scmp.ge.s32.totalorder %s1466_s21, 1 }
  0x10   : > { %s2256_s28 = scalar_select %p1588_p5, 1, 0 }
  0x11   : > { %s2258_s29 = scalar_select %p1592_p6, 1, 0 }
  0x12   : > { %2257 = sst [smem:[#allocation10_spill]] %s2256_s28  ;;  %p456_p8 = scmp.lt.s32.totalorder %s1466_s21, 3 }
  0x13   : > { %2259 = sst [smem:[#allocation11_spill]] %s2258_s29 }
  0x14   : > { %p457_p9 = pnand %p1316_p7, %p456_p8 }
  0x15   : > { %p510_p10 = scmp.lt.s32.totalorder (!%p457_p9), %s1571_s22, 1  ;;  %s2260_s0 = sld [smem:[#allocation12_spill]] (!%p457_p9) }
  0x16   : > { %460 = sbr.rel (%p457_p9) target bundleno = 1602 (0x642), region = 80  ;;  %s2263_s1 = sld [smem:[#allocation13_spill]] (!%p457_p9) }
  0x17   : > { %s1336_s28 = sshll.u32 (!%p457_p9), %s1571_s22, 4  ;;  %s1424_s18 = scalar_lea.hbm (!%p457_p9), %s2240_s15, 32 }
  0x18   : > { %s1229_s24 = scalar_lea.hbm (!%p457_p9), %s2240_s15, %s1336_s28 }
  0x1b   : > { %v649_v0 = vld [vmem:[%s2228_s3 + $0x178] sm:$0xff]  ;;  %v648_v1 = vld [vmem:[%s2228_s3 + $0x170] sm:$0xff]  ;;  %v647_v5 = vld [vmem:[%s2228_s3 + $0x168] sm:$0xff]  ;;  %s1669_s20 = scalar_select %p510_p10, %s1571_s22, 1  ;;  %vm549_vm0 = vcmask 1046528   ;;  %vm542_vm1 = vcmask 1040384  }
  0x1c   : > { %v587_v2 = vld [vmem:[%s2228_s3 + $0xf8] sm:$0xff]  ;;  %650 = vmatpush.msra.mxu2 %v649_v0  ;;  %v586_v4 = vld [vmem:[%s2228_s3 + $0xf0] sm:$0xff]  ;;  %v585_v7 = vld [vmem:[%s2228_s3 + $0xe8] sm:$0xff]  ;;  %vm709_vm3 = vcmask 64512  }
  0x1d   : > { %588 = vmatpush.msra.mxu0 %v587_v2  ;;  %v571_v3 = vld [vmem:[%s2228_s3 + $0x78] sm:$0xff]  ;;  %v570_v6 = vld [vmem:[%s2228_s3 + $0x70] sm:$0xff]  ;;  %v569_v8 = vld [vmem:[%s2228_s3 + $0x68] sm:$0xff]  ;;  %s1335_s25 = sshll.u32 %s1669_s20, 4  ;;  %s520_s27 = scalar_lea.vmem %s2227_s2, %s1669_s20 }
  0x1e   : > { %611 = vmatpush.msra.mxu1 %v571_v3  ;;  %651 = vmatpush.msra.mxu2 %v648_v1  ;;  %v646_v9 = vld [vmem:[%s2228_s3 + $0x160] sm:$0xff]  ;;  %v645_v12 = vld [vmem:[%s2228_s3 + $0x158] sm:$0xff]  ;;  %v644_v15 = vld [vmem:[%s2228_s3 + $0x150] sm:$0xff]  ;;  %s514_s30 = scalar_lea.vmem %s2260_s0, %s1335_s25  ;;  %s517_s17 = scalar_lea.vmem %s2263_s1, %s1669_s20 }
  0x1f   : > { %589 = vmatpush.msra.mxu0 %v586_v4  ;;  %v584_v10 = vld [vmem:[%s2228_s3 + $0xe0] sm:$0xff]  ;;  %v583_v13 = vld [vmem:[%s2228_s3 + $0xd8] sm:$0xff]  ;;  %v582_v16 = vld [vmem:[%s2228_s3 + $0xd0] sm:$0xff] }
  0x20   : > { %612 = vmatpush.msra.mxu1 %v570_v6  ;;  %652 = vmatpush.msra.mxu2 %v647_v5  ;;  %v568_v11 = vld [vmem:[%s2228_s3 + $0x60] sm:$0xff]  ;;  %v567_v14 = vld [vmem:[%s2228_s3 + $0x58] sm:$0xff]  ;;  %v566_v17 = vld [vmem:[%s2228_s3 + $0x50] sm:$0xff] }
  0x21   : > { %590 = vmatpush.msra.mxu0 %v585_v7  ;;  %v643_v18 = vld [vmem:[%s2228_s3 + $0x148] sm:$0xff]  ;;  %v642_v21 = vld [vmem:[%s2228_s3 + $0x140] sm:$0xff]  ;;  %v641_v24 = vld [vmem:[%s2228_s3 + $0x138] sm:$0xff] }
  0x22   : > { %613 = vmatpush.msra.mxu1 %v569_v8  ;;  %653 = vmatpush.msra.mxu2 %v646_v9  ;;  %v581_v19 = vld [vmem:[%s2228_s3 + $0xc8] sm:$0xff]  ;;  %v580_v22 = vld [vmem:[%s2228_s3 + $0xc0] sm:$0xff]  ;;  %v579_v25 = vld [vmem:[%s2228_s3 + $0xb8] sm:$0xff] }
  0x23   : > { %591 = vmatpush.msra.mxu0 %v584_v10  ;;  %v565_v20 = vld [vmem:[%s2228_s3 + $0x48] sm:$0xff]  ;;  %v564_v23 = vld [vmem:[%s2228_s3 + $0x40] sm:$0xff]  ;;  %v640_v26 = vld [vmem:[%s2228_s3 + $0x130] sm:$0xff] }
  0x24   : > { %614 = vmatpush.msra.mxu1 %v568_v11  ;;  %654 = vmatpush.msra.mxu2 %v645_v12  ;;  %v563_v27 = vld [vmem:[%s2228_s3 + $0x38] sm:$0xff]  ;;  %v639_v28 = vld [vmem:[%s2228_s3 + $0x128] sm:$0xff]  ;;  %v578_v29 = vld [vmem:[%s2228_s3 + $0xb0] sm:$0xff] }
  0x25   : > { %592 = vmatpush.msra.mxu0 %v583_v13  ;;  %v562_v30 = vld [vmem:[%s2228_s3 + $0x30] sm:$0xff]  ;;  %v577_v31 = vld [vmem:[%s2228_s3 + $0xa8] sm:$0xff]  ;;  %v1702_v32 = vld [vmem:[%s2238_s13 + $0x78] sm:$0xff] }
  0x26   : > { %615 = vmatpush.msra.mxu1 %v567_v14  ;;  %655 = vmatpush.msra.mxu2 %v644_v15  ;;  %v561_v33 = vld [vmem:[%s2228_s3 + $0x28] sm:$0xff]  ;;  %v638_v34 = vld [vmem:[%s2228_s3 + $0x120] sm:$0xff]  ;;  %v637_v36 = vld [vmem:[%s2228_s3 + $0x118] sm:$0xff] }
  0x27   : > { %593 = vmatpush.msra.mxu0 %v582_v16  ;;  %688 = vmatpush.msra.mxu3 %v1702_v32  ;;  %v576_v35 = vld [vmem:[%s2228_s3 + $0xa0] sm:$0xff]  ;;  %v575_v38 = vld [vmem:[%s2228_s3 + $0x98] sm:$0xff]  ;;  %v1728_v40 = vld [vmem:[%s514_s30 + $0x8] sm:$0xff] }
  0x28   : > { %616 = vmatpush.msra.mxu1 %v566_v17  ;;  %656 = vmatpush.msra.mxu2 %v643_v18  ;;  %v560_v37 = vld [vmem:[%s2228_s3 + $0x20] sm:$0xff]  ;;  %v559_v41 = vld [vmem:[%s2228_s3 + $0x18] sm:$0xff]  ;;  %v636_v42 = vld [vmem:[%s2228_s3 + $0x110] sm:$0xff]  ;;  %v551_v46 = vrot.slane %v1728_v40, 1  ;;  %v544_v56 = vrot.slane %v1728_v40, 7 }
  0x29   : > { %594 = vmatpush.msra.mxu0 %v581_v19  ;;  %v1726_v39 = vld [vmem:[%s514_s30] sm:$0xff]  ;;  %v574_v43 = vld [vmem:[%s2228_s3 + $0x90] sm:$0xff]  ;;  %v635_v47 = vld [vmem:[%s2228_s3 + $0x108] sm:$0xff] }
  0x2a   : > { %617 = vmatpush.msra.mxu1 %v565_v20  ;;  %657 = vmatpush.msra.mxu2 %v642_v21  ;;  %v558_v44 = vld [vmem:[%s2228_s3 + $0x10] sm:$0xff]  ;;  %v550_v45 = vrot.slane %v1726_v39, 1  ;;  %v573_v48 = vld [vmem:[%s2228_s3 + $0x88] sm:$0xff]  ;;  %v634_v50 = vld [vmem:[%s2228_s3 + $0x100] sm:$0xff]  ;;  %v543_v54 = vrot.slane %v1726_v39, 7 }
  0x2b   : > { %595 = vmatpush.msra.mxu0 %v580_v22  ;;  %v557_v49 = vld [vmem:[%s2228_s3 + $0x8] sm:$0xff]  ;;  %v572_v51 = vld [vmem:[%s2228_s3 + $0x80] sm:$0xff]  ;;  %vm1765_vm2 = vmneg %vm542_vm1 }
  0x2c   : > { %618 = vmatpush.msra.mxu1 %v564_v23  ;;  %658 = vmatpush.msra.mxu2 %v641_v24  ;;  %v552_v52 = vsel %vm549_vm0, %v550_v45, %v551_v46  ;;  %v556_v53 = vld [vmem:[%s2228_s3] sm:$0xff]  ;;  %v545_v57 = vsel %vm542_vm1, %v543_v54, %v544_v56  ;;  %v1780_v58 = vld [vmem:[%s2238_s13 + $0x70] sm:$0xff]  ;;  %v1787_v59 = vld [vmem:[%s2238_s13 + $0x68] sm:$0xff] }
  0x2d   : > { %596 = vmatpush.msra.mxu0 %v579_v25  ;;  %689 = vmatpush.msra.mxu3 %v1780_v58  ;;  %v1794_v60 = vld [vmem:[%s2238_s13 + $0x60] sm:$0xff]  ;;  %v1801_v61 = vld [vmem:[%s2238_s13 + $0x58] sm:$0xff]  ;;  %v1807_v62 = vld [vmem:[%s2238_s13 + $0x50] sm:$0xff] }
  0x2e   : > { %619 = vmatpush.msra.mxu1 %v563_v27  ;;  %659 = vmatpush.msra.mxu2 %v640_v26  ;;  %v1815_v63 = vld [vmem:[%s2238_s13 + $0x48] sm:$0xff]  ;;  %v1822_v0 = vld [vmem:[%s2238_s13 + $0x40] sm:$0xff]  ;;  %v1829_v1 = vld [vmem:[%s2238_s13 + $0x38] sm:$0xff] }
  0x2f   : > { %597 = vmatpush.msra.mxu0 %v578_v29  ;;  %690 = vmatpush.msra.mxu3 %v1787_v59  ;;  %v1836_v2 = vld [vmem:[%s2238_s13 + $0x30] sm:$0xff]  ;;  %v1843_v3 = vld [vmem:[%s2238_s13 + $0x28] sm:$0xff]  ;;  %v1848_v4 = vld [vmem:[%s2238_s13 + $0x20] sm:$0xff] }
  0x30   : > { %620 = vmatpush.msra.mxu1 %v562_v30  ;;  %660 = vmatpush.msra.mxu2 %v639_v28  ;;  %v1855_v5 = vld [vmem:[%s2238_s13 + $0x18] sm:$0xff]  ;;  %v1862_v6 = vld [vmem:[%s2238_s13 + $0x10] sm:$0xff]  ;;  %v1869_v7 = vld [vmem:[%s2238_s13 + $0x8] sm:$0xff] }
  0x31   : > { %598 = vmatpush.msra.mxu0 %v577_v31  ;;  %691 = vmatpush.msra.mxu3 %v1794_v60  ;;  %v1876_v8 = vld [vmem:[%s2238_s13] sm:$0xff]  ;;  %v906_v56 = vld [vmem:[%s2232_s7 + $0xe8] sm:$0xff] }
  0x32   : > { %621 = vmatpush.msra.mxu1 %v561_v33  ;;  %661 = vmatpush.msra.mxu2 %v638_v34  ;;  %v1885_v11 = vld [vmem:[%s2239_s14] sm:$0xff] }
  0x33   : > { %599 = vmatpush.msra.mxu0 %v576_v35  ;;  %692 = vmatpush.msra.mxu3 %v1801_v61  ;;  %v1378_v18 = vld [vmem:[%s2229_s4] ss:$0 sm:$0xff] }
  0x34   : > { %622 = vmatpush.msra.mxu1 %v560_v37  ;;  %662 = vmatpush.msra.mxu2 %v637_v36  ;;  %v1381_v55 = vld [vmem:[%s2233_s8] ss:$0 sm:$0xff] }
  0x35   : > { %600 = vmatpush.msra.mxu0 %v575_v38  ;;  %693 = vmatpush.msra.mxu3 %v1807_v62 }
  0x36   : > { %623 = vmatpush.msra.mxu1 %v559_v41  ;;  %663 = vmatpush.msra.mxu2 %v636_v42 }
  0x37   : > { %601 = vmatpush.msra.mxu0 %v574_v43  ;;  %694 = vmatpush.msra.mxu3 %v1815_v63 }
  0x38   : > { %624 = vmatpush.msra.mxu1 %v558_v44  ;;  %664 = vmatpush.msra.mxu2 %v635_v47 }
  0x39   : > { %602 = vmatpush.msra.mxu0 %v573_v48  ;;  %695 = vmatpush.msra.mxu3 %v1822_v0 }
  0x3a   : > { %625 = vmatpush.msra.mxu1 %v557_v49  ;;  %665 = vmatpush.msra.mxu2 %v634_v50  ;;  %v908_v50 = vld [vmem:[%s2232_s7 + $0xf8] sm:$0xff] }
  0x3b   : > { %603 = vmatpush.msra.mxu0 %v572_v51  ;;  %666 = vmatmul.f32.vlgmr.msra.gmra.mxu2 %v552_v52  ;;  %v907_v51 = vld [vmem:[%s2232_s7 + $0xf0] sm:$0xff]  ;;  %v892_v52 = vld [vmem:[%s2232_s7 + $0x78] sm:$0xff] }
  0x3c   : > { %626 = vmatpush.msra.mxu1 %v556_v53  ;;  %604 = vmatmul.f32.vlgmr.msra.gmra.mxu0 %v1726_v39  ;;  %v970_v53 = vld [vmem:[%s2232_s7 + $0x178] sm:$0xff] }
  0x3d   : > { %1321 = vmatmul.msk.f32.vlgmr.msra.gmra.mxu1 %vm1765_vm2, %v543_v54  ;;  %745 = vmatpush.msrb.mxu0 %v1702_v32  ;;  %v891_v54 = vld [vmem:[%s2232_s7 + $0x70] sm:$0xff] }
  0x3e   : > { %696 = vmatpush.msra.mxu3 %v1829_v1  ;;  %784 = vmatpush.msrb.mxu2 %v1885_v11 }
  0x3f   : > { %746 = vmatpush.msrb.mxu0 %v1780_v58  ;;  %971 = vmatpush.msrb.mxu1 %v970_v53 }
  0x40   : > { %697 = vmatpush.msra.mxu3 %v1836_v2  ;;  %909 = vmatpush.msra.mxu2 %v908_v50  ;;  %v959_v50 = vld [vmem:[%s2232_s7 + $0x120] sm:$0xff] }
  0x41   : > { %747 = vmatpush.msrb.mxu0 %v1787_v59 }
  0x42   : > { %698 = vmatpush.msra.mxu3 %v1843_v3  ;;  %910 = vmatpush.msra.mxu2 %v907_v51  ;;  %v896_v51 = vld [vmem:[%s2232_s7 + $0x98] sm:$0xff] }
  0x43   : > { %1322 = vmatmul.msk.f32.gmra.mxu2 %vm549_vm0, %v551_v46  ;;  %748 = vmatpush.msrb.mxu0 %v1794_v60 }
  0x44   : > { %607 = vmatmul.f32.gmra.mxu0 %v1728_v40  ;;  %699 = vmatpush.msra.mxu3 %v1848_v4 }
  0x45   : > { %630 = vmatmul.f32.gmra.mxu1 %v545_v57  ;;  %749 = vmatpush.msrb.mxu0 %v1801_v61  ;;  %v969_v57 = vld [vmem:[%s2232_s7 + $0x170] sm:$0xff] }
  0x46   : > { %700 = vmatpush.msra.mxu3 %v1855_v5  ;;  %972 = vmatpush.msrb.mxu1 %v969_v57  ;;  %v810_v57 = vld [vmem:[%s517_s17] sm:$0x1]  ;;  %s1232_s17 = sshll.u32 %s1229_s24, 4  ;;  %s1233_s17 = int_to_ptr.hbm [resolvable:$true] %s1232_s17 }
  0x47   : > { %750 = vmatpush.msrb.mxu0 %v1807_v62  ;;  %911 = vmatpush.msra.mxu2 %v906_v56  ;;  %v958_v56 = vld [vmem:[%s2232_s7 + $0x118] sm:$0xff]  ;;  %s1418_s20 = sshra.s32 %s1233_s17, 4  ;;  %s1419_s20 = int_to_ptr.hbm [resolvable:$true] %s1418_s20 }
  0x48   : > { %701 = vmatpush.msra.mxu3 %v1862_v6  ;;  %p1425_p0 = scmp.lt.s32.totalorder %s1419_s20, %s2240_s15 }
  0x49   : > { %751 = vmatpush.msrb.mxu0 %v1815_v63 }
  0x4a   : > { %702 = vmatpush.msra.mxu3 %v1869_v7 }
  0x4b   : > { %752 = vmatpush.msrb.mxu0 %v1822_v0 }
  0x4c   : > { %703 = vmatpush.msra.mxu3 %v1876_v8 }
  0x4d   : > { %753 = vmatpush.msrb.mxu0 %v1829_v1 }
  0x4e   : > { %728 = vmatpush.msrb.mxu3 %v1885_v11 }
  0x4f   : > { %754 = vmatpush.msrb.mxu0 %v1836_v2 }
  0x51   : > { %755 = vmatpush.msrb.mxu0 %v1843_v3 }
  0x53   : > { %756 = vmatpush.msrb.mxu0 %v1848_v4 }
  0x55   : > { %757 = vmatpush.msrb.mxu0 %v1855_v5 }
  0x57   : > { %758 = vmatpush.msrb.mxu0 %v1862_v6 }
  0x59   : > { %759 = vmatpush.msrb.mxu0 %v1869_v7 }
  0x5b   : > { %760 = vmatpush.msrb.mxu0 %v1876_v8 }
  0x5d   : > { %1009 = vmatpush.msra.mxu0 %v1702_v32 }
  0x5f   : > { %1010 = vmatpush.msra.mxu0 %v1780_v58 }
  0x61   : > { %1011 = vmatpush.msra.mxu0 %v1787_v59 }
  0x63   : > { %1012 = vmatpush.msra.mxu0 %v1794_v60 }
  0x65   : > { %1013 = vmatpush.msra.mxu0 %v1801_v61 }
  0x67   : > { %1014 = vmatpush.msra.mxu0 %v1807_v62 }
  0x69   : > { %1015 = vmatpush.msra.mxu0 %v1815_v63 }
  0x6b   : > { %1016 = vmatpush.msra.mxu0 %v1822_v0 }
  0x6d   : > { %1017 = vmatpush.msra.mxu0 %v1829_v1 }
  0x6f   : > { %1018 = vmatpush.msra.mxu0 %v1836_v2 }
  0x71   : > { %1019 = vmatpush.msra.mxu0 %v1843_v3 }
  0x73   : > { %1020 = vmatpush.msra.mxu0 %v1848_v4 }
  0x75   : > { %1021 = vmatpush.msra.mxu0 %v1855_v5 }
  0x77   : > { %1022 = vmatpush.msra.mxu0 %v1862_v6 }
  0x79   : > { %1023 = vmatpush.msra.mxu0 %v1869_v7 }
  0x7b   : > { %1024 = vmatpush.msra.mxu0 %v1876_v8 }
  0xb9   : > { %v605_v9 = vpop.f32.mrf.mxu0 }
  0xba   : > { %v628_v10 = vpop.f32.mrf.mxu1 }
  0xbb   : > { %v629_v13 = vadd.f32 %v628_v10, %v605_v9  ;;  %v890_v9 = vld [vmem:[%s2232_s7 + $0x68] sm:$0xff] }
  0xbc   : > { %v968_v10 = vld [vmem:[%s2232_s7 + $0x168] sm:$0xff] }
  0xbd   : > { %973 = vmatpush.msrb.mxu1 %v968_v10  ;;  %v879_v10 = vld [vmem:[%s2232_s7 + $0x10] sm:$0xff] }
  0xbe   : > { %v667_v12 = vpop.f32.mrf.mxu2 }
  0xbf   : > { %v673_v17 = vadd.f32 %v667_v12, %v629_v13  ;;  %v905_v12 = vld [vmem:[%s2232_s7 + $0xe0] sm:$0xff] }
  0xc0   : > { %v889_v13 = vld [vmem:[%s2232_s7 + $0x60] sm:$0xff]  ;;  %912 = vmatpush.msra.mxu2 %v905_v12 }
  0xc1   : > { %v608_v14 = vpop.f32.mrf.mxu0  ;;  %v679_v21 = vadd.f32 %v1378_v18, %v673_v17  ;;  %v904_v17 = vld [vmem:[%s2232_s7 + $0xd8] sm:$0xff] }
  0xc2   : > { %v631_v15 = vpop.f32.mrf.mxu1  ;;  %913 = vmatpush.msra.mxu2 %v904_v17  ;;  %v811_v17 = vadd.f32 1.0, %v810_v57 }
  0xc3   : > { %v632_v16 = vadd.f32 %v631_v15, %v608_v14  ;;  %v967_v15 = vld [vmem:[%s2232_s7 + $0x160] sm:$0xff] }
  0xc4   : > { %974 = vmatpush.msrb.mxu1 %v967_v15  ;;  %v894_v15 = vld [vmem:[%s2232_s7 + $0x88] sm:$0xff] }
  0xc6   : > { %v670_v19 = vpop.f32.mrf.mxu2 }
  0xc7   : > { %v674_v20 = vadd.f32 %v670_v19, %v632_v16  ;;  %v966_v19 = vld [vmem:[%s2232_s7 + $0x158] sm:$0xff] }
  0xc8   : > { %975 = vmatpush.msrb.mxu1 %v966_v19  ;;  %v1379_v19 = vld [vmem:[%s2231_s6] ss:$0 sm:$0xff] }
  0xc9   : > { %v680_v22 = vadd.f32 %v1378_v18, %v674_v20  ;;  %v888_v18 = vld [vmem:[%s2232_s7 + $0x58] sm:$0xff]  ;;  %v903_v20 = vld [vmem:[%s2232_s7 + $0xd0] sm:$0xff] }
  0xca   : > { %914 = vmatpush.msra.mxu2 %v903_v20  ;;  %v893_v20 = vld [vmem:[%s2232_s7 + $0x80] sm:$0xff] }
  0xcb   : > { %v681_v23 = vadd.f32 %v680_v22, %v679_v21 }
  0xcd   : > { %v682_v24 = vrot.slane %v681_v23, 4 }
  0xcf   : > { %v683_v25 = vadd.f32 %v682_v24, %v681_v23  ;;  %v902_v23 = vld [vmem:[%s2232_s7 + $0xc8] sm:$0xff] }
  0xd0   : > { %v886_v24 = vld [vmem:[%s2232_s7 + $0x48] sm:$0xff]  ;;  %915 = vmatpush.msra.mxu2 %v902_v23  ;;  %v813_v23 = vperm.slane %v811_v17, 0 }
  0xd1   : > { %v684_v26 = vrot.slane %v683_v25, 2 }
  0xd3   : > { %v685_v27 = vadd.f32 %v684_v26, %v683_v25  ;;  %v964_v25 = vld [vmem:[%s2232_s7 + $0x148] sm:$0xff]  ;;  %v901_v26 = vld [vmem:[%s2232_s7 + $0xc0] sm:$0xff] }
  0xd4   : > { %916 = vmatpush.msra.mxu2 %v901_v26  ;;  %v1380_v26 = vld [vmem:[%s520_s27] ss:$0 sm:$0xff]  ;;  %s507_s27 = sand.u32 1, %s1458_s19  }
  0xd5   : > { %v686_v28 = vrot.slane %v685_v27, 1  ;;  %s1317_s16 = sshll.u32 %s507_s27, 4  ;;  %s1218_s21 = scalar_lea.sflag [#allocation3], %s507_s27 }
  0xd6   : > { %s509_s22 = scalar_lea.vmem [#allocation2], %s1317_s16  ;;  %s1420_s16 = scalar_lea.hbm %s1419_s20, 16 }
  0xd7   : > { %v687_v29 = vadd.f32 %v686_v28, %v685_v27  ;;  %v885_v27 = vld [vmem:[%s2232_s7 + $0x40] sm:$0xff]  ;;  %s1230_s25 = sshll.u32 %s509_s22, 4  ;;  %p1421_p11 = scmp.ne.s32.totalorder %s1419_s20, %s1420_s16  ;;  %s1231_s25 = int_to_ptr.vmem [resolvable:$true] %s1230_s25 }
  0xd8   : > { %v963_v28 = vld [vmem:[%s2232_s7 + $0x140] sm:$0xff]  ;;  %p1426_p1 = scmp.lt.s32.totalorder %s1424_s18, %s1420_s16 }
  0xd9   : > { %704 = vmatmul.f32.vlgmr.msra.gmra.mxu3 %v687_v29  ;;  %p1422_p12 = pnand %p1421_p11, %p1588_p5 }
  0xda   : > { %932 = vmatpush.msra.mxu3 %v892_v52  ;;  %v880_v52 = vld [vmem:[%s2232_s7 + $0x18] sm:$0xff]  ;;  %p1427_p2 = por %p1426_p1, %p1425_p0 }
  0xdb   : > { %p1423_p13 = pneg %p1422_p12 }
  0xdc   : > { %933 = vmatpush.msra.mxu3 %v891_v54  ;;  %v799_v54 = vld [vmem:[%s2230_s5] sm:$0x1] }
  0xdd   : > { %p1428_p3 = pnand %p1427_p2, %p1423_p13 }
  0xde   : > { %934 = vmatpush.msra.mxu3 %v890_v9  ;;  %v895_v9 = vld [vmem:[%s2232_s7 + $0x90] sm:$0xff] }
  0xe0   : > { %935 = vmatpush.msra.mxu3 %v889_v13  ;;  %v957_v13 = vld [vmem:[%s2232_s7 + $0x110] sm:$0xff] }
  0xe2   : > { %936 = vmatpush.msra.mxu3 %v888_v18 }
 0x15c   : > { %v705_v30 = vpop.f32.mrf.mxu3 }
 0x15d   : > { %v708_v31 = vmul.f32 0.03125, %v705_v30  ;;  %v900_v30 = vld [vmem:[%s2232_s7 + $0xb8] sm:$0xff] }
 0x15e   : > { %917 = vmatpush.msra.mxu2 %v900_v30 }
 0x15f   : > { %1323 = vmatmul.msk.f32.vlgmr.msrb.gmra.mxu3 %vm709_vm3, %v708_v31  ;;  %v884_v31 = vld [vmem:[%s2232_s7 + $0x38] sm:$0xff] }
 0x1e2   : > { %v730_v33 = vpop.f32.mrf.mxu3 }
 0x1e3   : > { %v733_v34 = vperm.slane %v730_v33, 0 }
 0x1e5   : > { %v1909_v35 = vsub.f32 %v679_v21, %v733_v34  ;;  %v1911_v36 = vsub.f32 %v680_v22, %v733_v34  ;;  %v887_v21 = vld [vmem:[%s2232_s7 + $0x50] sm:$0xff]  ;;  %v962_v34 = vld [vmem:[%s2232_s7 + $0x138] sm:$0xff] }
 0x1e6   : > { %v965_v22 = vld [vmem:[%s2232_s7 + $0x150] sm:$0xff]  ;;  %937 = vmatpush.msra.mxu3 %v887_v21 }
 0x1e7   : > { %v736_v37 = vmul.f32 %v1909_v35, %v1909_v35  ;;  %v737_v38 = vmul.f32 %v1911_v36, %v1911_v36  ;;  %976 = vmatpush.msrb.mxu1 %v965_v22 }
 0x1e8   : > { %938 = vmatpush.msra.mxu3 %v886_v24 }
 0x1e9   : > { %v738_v41 = vadd.f32 %v737_v38, %v736_v37  ;;  %977 = vmatpush.msrb.mxu1 %v964_v25  ;;  %v899_v37 = vld [vmem:[%s2232_s7 + $0xb0] sm:$0xff] }
 0x1ea   : > { %939 = vmatpush.msra.mxu3 %v885_v27  ;;  %v883_v38 = vld [vmem:[%s2232_s7 + $0x30] sm:$0xff]  ;;  %918 = vmatpush.msra.mxu2 %v899_v37 }
 0x1eb   : > { %v739_v42 = vrot.slane %v738_v41, 4  ;;  %978 = vmatpush.msrb.mxu1 %v963_v28 }
 0x1ec   : > { %940 = vmatpush.msra.mxu3 %v884_v31  ;;  %v877_v31 = vld [vmem:[%s2232_s7] sm:$0xff] }
 0x1ed   : > { %v740_v43 = vadd.f32 %v739_v42, %v738_v41  ;;  %v961_v42 = vld [vmem:[%s2232_s7 + $0x130] sm:$0xff]  ;;  %979 = vmatpush.msrb.mxu1 %v962_v34  ;;  %v955_v34 = vld [vmem:[%s2232_s7 + $0x100] sm:$0xff] }
 0x1ee   : > { %941 = vmatpush.msra.mxu3 %v883_v38 }
 0x1ef   : > { %v741_v44 = vrot.slane %v740_v43, 2  ;;  %980 = vmatpush.msrb.mxu1 %v961_v42 }
 0x1f1   : > { %v742_v45 = vadd.f32 %v741_v44, %v740_v43  ;;  %v898_v43 = vld [vmem:[%s2232_s7 + $0xa8] sm:$0xff] }
 0x1f2   : > { %v882_v44 = vld [vmem:[%s2232_s7 + $0x28] sm:$0xff]  ;;  %919 = vmatpush.msra.mxu2 %v898_v43 }
 0x1f3   : > { %v743_v46 = vrot.slane %v742_v45, 1  ;;  %942 = vmatpush.msra.mxu3 %v882_v44 }
 0x1f5   : > { %v744_v47 = vadd.f32 %v743_v46, %v742_v45  ;;  %v960_v46 = vld [vmem:[%s2232_s7 + $0x128] sm:$0xff] }
 0x1f6   : > { %981 = vmatpush.msrb.mxu1 %v960_v46 }
 0x1f7   : > { %761 = vmatmul.f32.vlgmr.msrb.gmra.mxu0 %v744_v47  ;;  %v897_v47 = vld [vmem:[%s2232_s7 + $0xa0] sm:$0xff] }
 0x1f8   : > { %920 = vmatpush.msra.mxu2 %v897_v47  ;;  %982 = vmatpush.msrb.mxu1 %v959_v50 }
 0x1fa   : > { %921 = vmatpush.msra.mxu2 %v896_v51  ;;  %983 = vmatpush.msrb.mxu1 %v958_v56 }
 0x1fc   : > { %922 = vmatpush.msra.mxu2 %v895_v9  ;;  %984 = vmatpush.msrb.mxu1 %v957_v13 }
 0x1fe   : > { %923 = vmatpush.msra.mxu2 %v894_v15 }
 0x200   : > { %924 = vmatpush.msra.mxu2 %v893_v20 }
 0x274   : > { %v762_v48 = vpop.f32.mrf.mxu0 }
 0x275   : > { %v765_v49 = vmul.f32 0.03125, %v762_v48  ;;  %v881_v48 = vld [vmem:[%s2232_s7 + $0x20] sm:$0xff] }
 0x276   : > { %943 = vmatpush.msra.mxu3 %v881_v48 }
 0x277   : > { %1324 = vmatmul.msk.f32.vlgmr.msrb.gmra.mxu2 %vm709_vm3, %v765_v49 }
 0x278   : > { %944 = vmatpush.msra.mxu3 %v880_v52  ;;  %1048 = vmatpush.msrb.mxu2 %v1885_v11 }
 0x27a   : > { %945 = vmatpush.msra.mxu3 %v879_v10 }
 0x2fa   : > { %v786_v14 = vpop.f32.mrf.mxu2 }
 0x2fb   : > { %v1958_v16 = vadd.f32 1e-05, %v786_v14 }
 0x2fd   : > { %1384 = vrsqrt.f32 %v1958_v16  ;;  %vm795_vm5 = vweird.f32 %v1958_v16 }
 0x303   : > { %v1385_v29 = vpop.eup %1384 }
 0x304   : > { %v790_v33 = vmul.f32 %v1385_v29, %v1958_v16  ;;  %vm796_vm4 = vweird.f32 %v1385_v29  ;;  %v878_v16 = vld [vmem:[%s2232_s7 + $0x8] sm:$0xff] }
 0x305   : > { %vm797_vm6 = vmor %vm795_vm5, %vm796_vm4  ;;  %946 = vmatpush.msra.mxu3 %v878_v16 }
 0x306   : > { %v791_v41 = vmul.f32 %v1385_v29, %v790_v33 }
 0x307   : > { %947 = vmatpush.msra.mxu3 %v877_v31 }
 0x308   : > { %v792_v45 = vmul.f32 0.5, %v791_v41 }
 0x309   : > { %1065 = vmatpush.msrb.mxu3 %v1702_v32 }
 0x30a   : > { %v793_v49 = vsub.f32 1.5, %v792_v45 }
 0x30b   : > { %1066 = vmatpush.msrb.mxu3 %v1780_v58 }
 0x30c   : > { %v794_v53 = vmul.f32 %v1385_v29, %v793_v49 }
 0x30d   : > { %1067 = vmatpush.msrb.mxu3 %v1787_v59 }
 0x30e   : > { %v798_v12 = vsel %vm797_vm6, %v1385_v29, %v794_v53 }
 0x30f   : > { %v800_v14 = vmul.f32 %v799_v54, %v798_v12  ;;  %1068 = vmatpush.msrb.mxu3 %v1794_v60 }
 0x311   : > { %v801_v18 = vperm.slane %v800_v14, 0  ;;  %1069 = vmatpush.msrb.mxu3 %v1801_v61 }
 0x313   : > { %v802_v21 = vmul.f32 %v801_v18, %v1909_v35  ;;  %v803_v22 = vmul.f32 %v801_v18, %v1911_v36  ;;  %v956_v35 = vld [vmem:[%s2232_s7 + $0x108] sm:$0xff]  ;;  %1070 = vmatpush.msrb.mxu3 %v1807_v62 }
 0x314   : > { %985 = vmatpush.msrb.mxu1 %v956_v35 }
 0x315   : > { %v809_v24 = vadd.f32 %v1379_v19, %v803_v22  ;;  %v808_v25 = vadd.f32 %v1379_v19, %v802_v21  ;;  %1071 = vmatpush.msrb.mxu3 %v1815_v63 }
 0x316   : > { %986 = vmatpush.msrb.mxu1 %v955_v34 }
 0x317   : > { %v815_v27 = vmul.f32 %v813_v23, %v808_v25  ;;  %v816_v28 = vmul.f32 %v813_v23, %v809_v24  ;;  %1072 = vmatpush.msrb.mxu3 %v1822_v0 }
 0x319   : > { %v821_v29 = vadd.f32 %v1380_v26, %v815_v27  ;;  %v2080_v30 = vadd.f32 %v1380_v26, %v816_v28  ;;  %1073 = vmatpush.msrb.mxu3 %v1829_v1 }
 0x31b   : > { %v823_v36 = vsub.f32 0.0, %v821_v29  ;;  %v824_v33 = vsub.f32 0.0, %v2080_v30  ;;  %1074 = vmatpush.msrb.mxu3 %v1836_v2 }
 0x31d   : > { %v825_v37 = vmul.f32 1.442695, %v823_v36  ;;  %v827_v38 = vmul.f32 1.442695, %v824_v33  ;;  %1075 = vmatpush.msrb.mxu3 %v1843_v3 }
 0x31f   : > { %1386 = vpow2.f32 %v825_v37  ;;  %1076 = vmatpush.msrb.mxu3 %v1848_v4 }
 0x320   : > { %1388 = vpow2.f32 %v827_v38 }
 0x321   : > { %1077 = vmatpush.msrb.mxu3 %v1855_v5 }
 0x323   : > { %1078 = vmatpush.msrb.mxu3 %v1862_v6 }
 0x325   : > { %v1387_v41 = vpop.eup %1386  ;;  %1079 = vmatpush.msrb.mxu3 %v1869_v7 }
 0x326   : > { %v1389_v42 = vpop.eup %1388  ;;  %v829_v43 = vadd.f32 1.0, %v1387_v41 }
 0x327   : > { %v830_v44 = vadd.f32 1.0, %v1389_v42  ;;  %1080 = vmatpush.msrb.mxu3 %v1876_v8 }
 0x328   : > { %1390 = vrcp.f32 %v829_v43  ;;  %v842_v45 = vand.u32 2147483648, %v829_v43  ;;  %v840_v47 = vand.u32 2147483647, %v829_v43  ;;  %vm836_vm9 = vweird.f32 %v829_v43 }
 0x329   : > { %1392 = vrcp.f32 %v830_v44  ;;  %v857_v48 = vand.u32 2147483648, %v830_v44  ;;  %v855_v0 = vand.u32 2147483647, %v830_v44  ;;  %vm851_vm11 = vweird.f32 %v830_v44 }
 0x32a   : > { %v843_v2 = vor.u32 1.1754944e-38, %v842_v45  ;;  %vm841_vm12 = vcmp.eq.f32.partialorder %v840_v47, 8.507059e+37  ;;  %v1181_v45 = vld [vmem:[%s2236_s11 + $0x58] sm:$0xff]  ;;  %v1178_v47 = vld [vmem:[%s2236_s11 + $0x40] sm:$0xff] }
 0x32b   : > { %v858_v50 = vor.u32 1.1754944e-38, %v857_v48  ;;  %vm856_vm14 = vcmp.eq.f32.partialorder %v855_v0, 8.507059e+37  ;;  %v1177_v48 = vld [vmem:[%s2236_s11 + $0x38] sm:$0xff]  ;;  %v1175_v0 = vld [vmem:[%s2236_s11 + $0x28] sm:$0xff] }
 0x32e   : > { %v1391_v32 = vpop.eup %1390 }
 0x32f   : > { %v1393_v58 = vpop.eup %1392  ;;  %v832_v59 = vmul.f32 %v1391_v32, %v829_v43  ;;  %vm837_vm7 = vweird.f32 %v1391_v32 }
 0x330   : > { %v847_v60 = vmul.f32 %v1393_v58, %v830_v44  ;;  %vm852_vm8 = vweird.f32 %v1393_v58  ;;  %vm838_vm10 = vmor %vm836_vm9, %vm837_vm7 }
 0x331   : > { %v833_v61 = vsub.f32 1.0, %v832_v59  ;;  %vm853_vm13 = vmor %vm851_vm11, %vm852_vm8  ;;  %v1184_v59 = vld [vmem:[%s2236_s11 + $0x70] sm:$0xff] }
 0x332   : > { %v848_v46 = vsub.f32 1.0, %v847_v60  ;;  %v1183_v60 = vld [vmem:[%s2236_s11 + $0x68] sm:$0xff] }
 0x333   : > { %v834_v62 = vmul.f32 %v1391_v32, %v833_v61  ;;  %v1182_v61 = vld [vmem:[%s2236_s11 + $0x60] sm:$0xff] }
 0x334   : > { %v849_v63 = vmul.f32 %v1393_v58, %v848_v46  ;;  %v1180_v46 = vld [vmem:[%s2236_s11 + $0x50] sm:$0xff] }
 0x335   : > { %v835_v1 = vadd.f32 %v1391_v32, %v834_v62  ;;  %v1179_v62 = vld [vmem:[%s2236_s11 + $0x48] sm:$0xff] }
 0x336   : > { %v850_v49 = vadd.f32 %v1393_v58, %v849_v63  ;;  %v1176_v63 = vld [vmem:[%s2236_s11 + $0x30] sm:$0xff] }
 0x337   : > { %v839_v3 = vsel %vm838_vm10, %v1391_v32, %v835_v1  ;;  %v1174_v1 = vld [vmem:[%s2236_s11 + $0x20] sm:$0xff] }
 0x338   : > { %v844_v51 = vsel %vm841_vm12, %v843_v2, %v839_v3  ;;  %v854_v52 = vsel %vm853_vm13, %v1393_v58, %v850_v49  ;;  %v1185_v58 = vld [vmem:[%s2236_s11 + $0x78] sm:$0xff]  ;;  %v1172_v49 = vld [vmem:[%s2236_s11 + $0x10] sm:$0xff]  ;;  %v1171_v3 = vld [vmem:[%s2236_s11 + $0x8] sm:$0xff] }
 0x339   : > { %v861_v4 = vmul.f32 %v844_v51, %v821_v29  ;;  %v859_v53 = vsel %vm856_vm14, %v858_v50, %v854_v52  ;;  %1190 = vmatpush.msra.mxu1 %v1185_v58  ;;  %v1173_v2 = vld [vmem:[%s2236_s11 + $0x18] sm:$0xff]  ;;  %v1170_v50 = vld [vmem:[%s2236_s11] sm:$0xff] }
 0x33a   : > { %v862_v54 = vmul.f32 %v859_v53, %v2080_v30 }
 0x33b   : > { %925 = vmatmul.f32.vlgmr.msra.gmra.mxu2 %v861_v4  ;;  %v865_v5 = vrot.slane %v861_v4, 7  ;;  %v871_v56 = vrot.slane %v861_v4, 1  ;;  %1191 = vmatpush.msra.mxu1 %v1184_v59 }
 0x33c   : > { %v872_v57 = vrot.slane %v862_v54, 1  ;;  %1104 = vmatpush.msra.mxu2 %v1885_v11  ;;  %v866_v9 = vrot.slane %v862_v54, 7 }
 0x33d   : > { %1326 = vmatmul.msk.f32.vlgmr.msra.gmra.mxu3 %vm1765_vm2, %v865_v5  ;;  %1192 = vmatpush.msra.mxu1 %v1183_v60 }
 0x33e   : > { %v873_v6 = vsel %vm549_vm0, %v871_v56, %v872_v57  ;;  %v867_v7 = vsel %vm542_vm1, %v865_v5, %v866_v9 }
 0x33f   : > { %987 = vmatmul.f32.vlgmr.msrb.gmra.mxu1 %v873_v6 }
 0x340   : > { %1193 = vmatpush.msra.mxu1 %v1182_v61 }
 0x342   : > { %1194 = vmatpush.msra.mxu1 %v1181_v45 }
 0x343   : > { %928 = vmatmul.f32.gmra.mxu2 %v862_v54 }
 0x344   : > { %1195 = vmatpush.msra.mxu1 %v1180_v46 }
 0x345   : > { %951 = vmatmul.f32.gmra.mxu3 %v867_v7  ;;  %v1119_v7 = vld [vmem:[%s2234_s9] sm:$0x1] }
 0x346   : > { %1196 = vmatpush.msra.mxu1 %v1179_v62 }
 0x347   : > { %1327 = vmatmul.msk.f32.gmra.mxu1 %vm549_vm0, %v872_v57 }
 0x348   : > { %1197 = vmatpush.msra.mxu1 %v1178_v47 }
 0x34a   : > { %1198 = vmatpush.msra.mxu1 %v1177_v48 }
 0x34c   : > { %1199 = vmatpush.msra.mxu1 %v1176_v63 }
 0x34e   : > { %1200 = vmatpush.msra.mxu1 %v1175_v0 }
 0x350   : > { %1201 = vmatpush.msra.mxu1 %v1174_v1 }
 0x352   : > { %1202 = vmatpush.msra.mxu1 %v1173_v2 }
 0x354   : > { %1203 = vmatpush.msra.mxu1 %v1172_v49 }
 0x356   : > { %1204 = vmatpush.msra.mxu1 %v1171_v3 }
 0x358   : > { %1205 = vmatpush.msra.mxu1 %v1170_v50 }
 0x359   : > { %1206 = vmatmul.f32.vlgmr.msra.gmra.mxu1 %v1726_v39 }
 0x361   : > { %1209 = vmatmul.f32.gmra.mxu1 %v1728_v40  ;;  %v1382_v40 = vld [vmem:[%s2235_s10] ss:$0 sm:$0xff] }
 0x3bc   : > { %v988_v12 = vpop.f32.mrf.mxu1 }
 0x3be   : > { %v926_v10 = vpop.f32.mrf.mxu2 }
 0x3c0   : > { %v949_v13 = vpop.f32.mrf.mxu3 }
 0x3c1   : > { %v950_v8 = vadd.f32 %v949_v13, %v926_v10 }
 0x3c3   : > { %v994_v11 = vadd.f32 %v988_v12, %v950_v8 }
 0x3c4   : > { %v991_v17 = vpop.f32.mrf.mxu1 }
 0x3c5   : > { %v1000_v19 = vadd.f32 %v1381_v55, %v994_v11 }
 0x3c6   : > { %v929_v14 = vpop.f32.mrf.mxu2 }
 0x3c8   : > { %v952_v15 = vpop.f32.mrf.mxu3 }
 0x3c9   : > { %v953_v16 = vadd.f32 %v952_v15, %v929_v14 }
 0x3cb   : > { %v995_v18 = vadd.f32 %v991_v17, %v953_v16 }
 0x3cd   : > { %v1001_v20 = vadd.f32 %v1381_v55, %v995_v18 }
 0x3cf   : > { %v1002_v21 = vadd.f32 %v1001_v20, %v1000_v19 }
 0x3d1   : > { %v1003_v22 = vrot.slane %v1002_v21, 4 }
 0x3d3   : > { %v1004_v23 = vadd.f32 %v1003_v22, %v1002_v21 }
 0x3d5   : > { %v1005_v24 = vrot.slane %v1004_v23, 2 }
 0x3d6   : > { %v1207_v22 = vpop.f32.mrf.mxu1 }
 0x3d7   : > { %v1006_v25 = vadd.f32 %v1005_v24, %v1004_v23 }
 0x3d9   : > { %v1007_v26 = vrot.slane %v1006_v25, 1 }
 0x3db   : > { %v1008_v27 = vadd.f32 %v1007_v26, %v1006_v25 }
 0x3dd   : > { %1025 = vmatmul.f32.vlgmr.msra.gmra.mxu0 %v1008_v27 }
 0x45a   : > { %v1026_v28 = vpop.f32.mrf.mxu0 }
 0x45b   : > { %v1029_v29 = vmul.f32 0.03125, %v1026_v28 }
 0x45d   : > { %1328 = vmatmul.msk.f32.vlgmr.msrb.gmra.mxu2 %vm709_vm3, %v1029_v29 }
 0x4e0   : > { %v1050_v30 = vpop.f32.mrf.mxu2 }
 0x4e1   : > { %v1053_v35 = vperm.slane %v1050_v30, 0 }
 0x4e3   : > { %v2119_v36 = vsub.f32 %v1000_v19, %v1053_v35  ;;  %v2121_v31 = vsub.f32 %v1001_v20, %v1053_v35 }
 0x4e5   : > { %v1056_v33 = vmul.f32 %v2119_v36, %v2119_v36  ;;  %v1057_v34 = vmul.f32 %v2121_v31, %v2121_v31 }
 0x4e7   : > { %v1058_v37 = vadd.f32 %v1057_v34, %v1056_v33 }
 0x4e9   : > { %v1059_v38 = vrot.slane %v1058_v37, 4 }
 0x4eb   : > { %v1060_v41 = vadd.f32 %v1059_v38, %v1058_v37  ;;  %v1383_v37 = vld [vmem:[%s2237_s12] ss:$0 sm:$0xff]  ;;  %v1210_v38 = vpop.f32.mrf.mxu1 }
 0x4ec   : > { %v1211_v59 = vadd.f32 %v1383_v37, %v1210_v38  ;;  %v1208_v61 = vadd.f32 %v1383_v37, %v1207_v22 }
 0x4ed   : > { %v1061_v42 = vrot.slane %v1060_v41, 2 }
 0x4ef   : > { %v1062_v43 = vadd.f32 %v1061_v42, %v1060_v41 }
 0x4f1   : > { %v1063_v44 = vrot.slane %v1062_v43, 1 }
 0x4f3   : > { %v1064_v32 = vadd.f32 %v1063_v44, %v1062_v43 }
 0x4f5   : > { %1081 = vmatmul.f32.vlgmr.msrb.gmra.mxu3 %v1064_v32 }
 0x578   : > { %v1082_v51 = vpop.f32.mrf.mxu3 }
 0x579   : > { %v1085_v52 = vmul.f32 0.03125, %v1082_v51 }
 0x57b   : > { %1329 = vmatmul.msk.f32.vlgmr.msra.gmra.mxu2 %vm709_vm3, %v1085_v52 }
 0x5fe   : > { %v1106_v4 = vpop.f32.mrf.mxu2 }
 0x5ff   : > { %v1107_v53 = vadd.f32 1e-05, %v1106_v4 }
 0x601   : > { %1394 = vrsqrt.f32 %v1107_v53  ;;  %vm1115_vm0 = vweird.f32 %v1107_v53 }
 0x607   : > { %v1395_v54 = vpop.eup %1394 }
 0x608   : > { %v1110_v5 = vmul.f32 %v1395_v54, %v1107_v53  ;;  %vm1116_vm15 = vweird.f32 %v1395_v54 }
 0x609   : > { %vm1117_vm1 = vmor %vm1115_vm0, %vm1116_vm15 }
 0x60a   : > { %v1111_v56 = vmul.f32 %v1395_v54, %v1110_v5 }
 0x60c   : > { %v1112_v57 = vmul.f32 0.5, %v1111_v56 }
 0x60e   : > { %v1113_v6 = vsub.f32 1.5, %v1112_v57 }
 0x610   : > { %v1114_v9 = vmul.f32 %v1395_v54, %v1113_v6 }
 0x612   : > { %v1118_v10 = vsel %vm1117_vm1, %v1395_v54, %v1114_v9 }
 0x613   : > { %v1120_v39 = vmul.f32 %v1119_v7, %v1118_v10 }
 0x615   : > { %v1121_v12 = vperm.slane %v1120_v39, 0 }
 0x617   : > { %v1122_v13 = vmul.f32 %v1121_v12, %v2119_v36  ;;  %v1123_v8 = vmul.f32 %v1121_v12, %v2121_v31 }
 0x619   : > { %v1128_v14 = vadd.f32 %v1382_v40, %v1122_v13  ;;  %v1129_v15 = vadd.f32 %v1382_v40, %v1123_v8 }
 0x61b   : > { %v1130_v11 = vsub.f32 0.0, %v1128_v14  ;;  %v1131_v55 = vsub.f32 0.0, %v1129_v15 }
 0x61d   : > { %v1132_v16 = vmul.f32 1.442695, %v1130_v11  ;;  %v1134_v17 = vmul.f32 1.442695, %v1131_v55 }
 0x61f   : > { %1396 = vpow2.f32 %v1132_v16 }
 0x620   : > { %1398 = vpow2.f32 %v1134_v17 }
 0x625   : > { %v1397_v18 = vpop.eup %1396 }
 0x626   : > { %v1399_v19 = vpop.eup %1398  ;;  %v1136_v20 = vadd.f32 1.0, %v1397_v18 }
 0x627   : > { %v1137_v21 = vadd.f32 1.0, %v1399_v19 }
 0x628   : > { %1400 = vrcp.f32 %v1136_v20  ;;  %v1149_v28 = vand.u32 2147483648, %v1136_v20  ;;  %v1147_v35 = vand.u32 2147483647, %v1136_v20  ;;  %vm1143_vm4 = vweird.f32 %v1136_v20 }
 0x629   : > { %1402 = vrcp.f32 %v1137_v21  ;;  %v1164_v36 = vand.u32 2147483648, %v1137_v21  ;;  %v1162_v33 = vand.u32 2147483647, %v1137_v21  ;;  %vm1158_vm6 = vweird.f32 %v1137_v21 }
 0x62a   : > { %v1150_v41 = vor.u32 1.1754944e-38, %v1149_v28  ;;  %vm1148_vm7 = vcmp.eq.f32.partialorder %v1147_v35, 8.507059e+37 }
 0x62b   : > { %v1165_v44 = vor.u32 1.1754944e-38, %v1164_v36  ;;  %vm1163_vm9 = vcmp.eq.f32.partialorder %v1162_v33, 8.507059e+37 }
 0x62e   : > { %v1401_v23 = vpop.eup %1400 }
 0x62f   : > { %v1403_v24 = vpop.eup %1402  ;;  %v1139_v25 = vmul.f32 %v1401_v23, %v1136_v20  ;;  %vm1144_vm2 = vweird.f32 %v1401_v23 }
 0x630   : > { %v1154_v26 = vmul.f32 %v1403_v24, %v1137_v21  ;;  %vm1159_vm3 = vweird.f32 %v1403_v24  ;;  %vm1145_vm5 = vmor %vm1143_vm4, %vm1144_vm2 }
 0x631   : > { %v1140_v27 = vsub.f32 1.0, %v1139_v25  ;;  %vm1160_vm8 = vmor %vm1158_vm6, %vm1159_vm3 }
 0x632   : > { %v1155_v29 = vsub.f32 1.0, %v1154_v26 }
 0x633   : > { %v1141_v30 = vmul.f32 %v1401_v23, %v1140_v27 }
 0x634   : > { %v1156_v31 = vmul.f32 %v1403_v24, %v1155_v29 }
 0x635   : > { %v1142_v34 = vadd.f32 %v1401_v23, %v1141_v30 }
 0x636   : > { %v1157_v42 = vadd.f32 %v1403_v24, %v1156_v31 }
 0x637   : > { %v1146_v43 = vsel %vm1145_vm5, %v1401_v23, %v1142_v34 }
 0x638   : > { %v1151_v32 = vsel %vm1148_vm7, %v1150_v41, %v1146_v43  ;;  %v1161_v58 = vsel %vm1160_vm8, %v1403_v24, %v1157_v42 }
 0x639   : > { %v1168_v60 = vmul.f32 %v1151_v32, %v1128_v14  ;;  %v1166_v45 = vsel %vm1163_vm9, %v1165_v44, %v1161_v58 }
 0x63a   : > { %v1169_v46 = vmul.f32 %v1166_v45, %v1129_v15 }
 0x63b   : > { %v1213_v62 = vadd.f32 %v1208_v61, %v1168_v60 }
 0x63c   : > { %v1214_v47 = vadd.f32 %v1211_v59, %v1169_v46 }
 0x63d   : > { %1215 = vst [vmem:[%s509_s22] sm:$0xff] %v1213_v62 }
 0x63e   : > { %1216 = vst [vmem:[%s509_s22 + $0x8] sm:$0xff] %v1214_v47 }
 0x63f   : > { %1431 = shalt.err (!%p1428_p3)
}
 0x640   : > { %s1468_s27 = smov 128   ;;  %s1469_s24 = smov 8  }
 0x641   : > { %1337 = dma.vmem_to_hbm [thread:$0]  (%p1588_p5), %s1231_s25, 256, %s1233_s17, %s1218_s21, %s1468_s27, %s1468_s27, %s1469_s24  }
 0x642 PF: > { %s2265_s22 = sld [smem:[#allocation7_spill]] }
 0x643   : > { %s2266_s0 = sld [smem:[#allocation5_spill]] }
 0x648   : > { %p1343_p4 = scmp.ge.s32.totalorder %s2265_s22, 2 }
 0x649   : > { %s1247_s28 = sand.u32 1, %s2266_s0  }
 0x64a   : > { %p1340_p7 = pnand %p1343_p4, %p1592_p6  ;;  %s1248_s23 = scalar_lea.sflag [#allocation3], %s1247_s28 }
 0x64c   : > { %p1341_p8 = pneg %p1340_p7 }
 0x64e   : > { %1449 = dma.done.wait (%p1341_p8), %s1248_s23, 256  }
 0x64f   : > { %1451 = vsyncadd (%p1341_p8), %s1248_s23, 4294967040  ;;  %s2268_s21 = sld [smem:[#allocation8_spill]]  ;;  %s2271_s18 = smov %s1458_s19 }
 0x650   : > { %s2269_s20 = sld [smem:[#allocation6_spill]] }
 0x651   : > { %s2270_s16 = sld [smem:[#allocation9_spill]] }
 0x655   : > { %p25_p9 = scmp.ge.s32.totalorder %s2268_s21, 4  }
 0x656   : > { %s2272_s19 = smov %s2269_s20 }
 0x657   : > { %s2273_s20 = smov %s2270_s16  ;;  %27 = sbr.rel (!%p25_p9) target bundleno = 6 (0x6), region = 121 }
 0x65c   :  { %1254 = vsyncpa [#allocation3], 1 }
 0x65d   :  { %1256 = vsyncpa [#allocation3 + $0x1], 1 }

</bundles_post_ra>
